<compile_context>
chip_gen: v7x
topology: tpu7x:2x2x1
jax: 0.10.0
libtpu: 0.0.40
codegen_flags: <defaults>
</compile_context>

<pallas_src>
import functools

import jax
import jax.numpy as jnp
from jax.experimental import pallas as pl
from jax.experimental.pallas import tpu as pltpu

EPS = 1e-5


def _lstm_kernel(x_ref, scale_ref, shift_ref,
                 w_ih0_ref, w_hh0_ref, b0_ref,
                 w_ih1_ref, w_hh1_ref, b1_ref,
                 w_fc_ref, b_fc_ref,
                 out_ref,
                 gates_buf, seq_buf,
                 *, seq_len, batch_pad, batch):
    """x_ref: (S*Bp, Din) time-major, batch-padded rows (row = s*Bp + b).

    All weights pre-transposed to (in, out); gate order i, f, g, o.
    gates_buf: (S*Bp, 4H) VMEM scratch for the hoisted input projections.
    seq_buf:   (S*Bp, H)  VMEM scratch for the layer-0 output sequence.
    """
    S, Bp, B = seq_len, batch_pad, batch
    H = w_hh0_ref.shape[0]

    # ---- layer 0 input projection, batched over all (s, b) rows, with the
    #      eval-mode BatchNorm folded in post-matmul:
    #      (x*scale + shift) @ W = scale * (x @ W) + shift * colsum(W)
    w_ih0 = w_ih0_ref[...]                                           # (Din, 4H)
    xw = jnp.dot(x_ref[...], w_ih0,
                 preferred_element_type=jnp.float32)                 # (S*Bp, 4H)
    w0_colsum = jnp.sum(w_ih0, axis=0, keepdims=True)                # (1, 4H)
    gates_buf[...] = (scale_ref[...] * xw
                      + shift_ref[...] * w0_colsum
                      + b0_ref[...])                                 # bias folded in

    def recurrence(w_hh_ref, *, store_seq):
        """Serial LSTM recurrence; per step only the h-dependent matmul remains."""
        w_hh = w_hh_ref[...]                                         # hoisted load
        h = jnp.zeros((Bp, H), jnp.float32)
        c = jnp.zeros((Bp, H), jnp.float32)
        for t in range(S):                                           # static unroll (S small)
            # t*Bp is a static, sublane-aligned offset (Bp % 8 == 0) -> unmasked loads.
            gates = gates_buf[pl.ds(t * Bp, Bp), :] + jnp.dot(
                h, w_hh, preferred_element_type=jnp.float32)         # (Bp, 4H)
            sig = jax.nn.sigmoid(gates)       # one full-width EUP push covers i, f, o
            th = jnp.tanh(gates)              # one full-width EUP push covers g
            i_g = sig[:, 0:H]
            f_g = sig[:, H:2 * H]
            o_g = sig[:, 3 * H:4 * H]
            g_g = th[:, 2 * H:3 * H]
            c = f_g * c + i_g * g_g
            h = o_g * jnp.tanh(c)
            if store_seq:
                seq_buf[pl.ds(t * Bp, Bp), :] = h                    # layer-0 outputs only
        return h

    # ---- layer 0: stores its output sequence for layer 1's projection ----
    recurrence(w_hh0_ref, store_seq=True)

    # ---- layer 1 input projection: one batched matmul over the stored sequence ----
    gates_buf[...] = (jnp.dot(seq_buf[...], w_ih1_ref[...],
                              preferred_element_type=jnp.float32)
                      + b1_ref[...])

    # ---- layer 1: no dead sequence stores, only the final hidden state is used ----
    h_last = recurrence(w_hh1_ref, store_seq=False)

    # ---- fc on the last time step of the top layer; drop padded batch rows ----
    fc = (jnp.dot(h_last, w_fc_ref[...], preferred_element_type=jnp.float32)
          + b_fc_ref[...])                                           # (Bp, O)
    out_ref[...] = fc[0:B, :]


def _full_spec(shape):
    zeros = (0,) * len(shape)
    return pl.BlockSpec(shape, lambda i, z=zeros: z)


def lstm_forward(x, p):
    """x: (B, S, Din) float32, batch_first like the PyTorch module."""
    B, S, Din = x.shape
    H = p["w_hh0"].shape[0]
    O = p["w_fc"].shape[1]
    Bp = ((B + 7) // 8) * 8          # pad batch to a sublane (8) multiple

    # Time-major, batch-padded, flattened to rows: row = s*Bp + b.
    x_tm = jnp.transpose(x, (1, 0, 2)).astype(jnp.float32)           # (S, B, Din)
    x_tm = jnp.pad(x_tm, ((0, 0), (0, Bp - B), (0, 0)))              # (S, Bp, Din)
    x_rows = x_tm.reshape(S * Bp, Din)

    # Fold eval-mode BatchNorm1d(seq_len) running stats into per-row scale/shift
    # (constant parameter preprocessing; the matmul folding happens in-kernel).
    scale = p["bn_g"] / jnp.sqrt(p["bn_v"] + EPS)                    # (S, 1)
    shift = p["bn_b"] - p["bn_m"] * scale                            # (S, 1)
    scale_rows = jnp.repeat(scale, Bp, axis=0)                       # (S*Bp, 1)
    shift_rows = jnp.repeat(shift, Bp, axis=0)                       # (S*Bp, 1)

    args = (x_rows, scale_rows, shift_rows,
            p["w_ih0"], p["w_hh0"], p["b0"],
            p["w_ih1"], p["w_hh1"], p["b1"],
            p["w_fc"], p["b_fc"])

    kernel = pl.pallas_call(
        functools.partial(_lstm_kernel, seq_len=S, batch_pad=Bp, batch=B),
        out_shape=jax.ShapeDtypeStruct((B, O), jnp.float32),
        grid=(1,),  # single-step grid (no-op); recurrence is inherently serial
        in_specs=[_full_spec(a.shape) for a in args],
        out_specs=_full_spec((B, O)),
        scratch_shapes=[
            pltpu.VMEM((S * Bp, 4 * H), jnp.float32),  # hoisted per-step gate inputs
            pltpu.VMEM((S * Bp, H), jnp.float32),      # layer-0 output sequence
        ],
        compiler_params=pltpu.CompilerParams(
            dimension_semantics=("arbitrary",)),
    )
    return kernel(*args)


# ---------------- pure-JAX reference (for correctness check) ----------------
def ref_forward(x, p):
    scale = p["bn_g"][:, 0] / jnp.sqrt(p["bn_v"][:, 0] + EPS)
    shift = p["bn_b"][:, 0] - p["bn_m"][:, 0] * scale
    xbn = x * scale[None, :, None] + shift[None, :, None]

    def layer(inp, w_ih, w_hh, b):
        B = inp.shape[0]
        H = w_hh.shape[0]

        def step(carry, x_t):
            h, c = carry
            gates = x_t @ w_ih + h @ w_hh + b
            i = jax.nn.sigmoid(gates[:, 0:H])
            f = jax.nn.sigmoid(gates[:, H:2 * H])
            g = jnp.tanh(gates[:, 2 * H:3 * H])
            o = jax.nn.sigmoid(gates[:, 3 * H:4 * H])
            c = f * c + i * g
            h = o * jnp.tanh(c)
            return (h, c), h

        init = (jnp.zeros((B, H), jnp.float32), jnp.zeros((B, H), jnp.float32))
        (h_T, _), outs = jax.lax.scan(step, init, jnp.transpose(inp, (1, 0, 2)))
        return jnp.transpose(outs, (1, 0, 2)), h_T

    out0, _ = layer(xbn, p["w_ih0"], p["w_hh0"], p["b0"][0])
    _, h_T = layer(out0, p["w_ih1"], p["w_hh1"], p["b1"][0])
    return h_T @ p["w_fc"] + p["b_fc"][0]


def make_params(key, input_dim, hidden_dim, output_dim, seq_len):
    """Deterministic synthetic parameters (PyTorch-style uniform(-1/sqrt(H), 1/sqrt(H)))."""
    H, D, O, S = hidden_dim, input_dim, output_dim, seq_len
    k = 1.0 / jnp.sqrt(jnp.float32(H))
    keys = jax.random.split(key, 16)
    u = lambda kk, shape, s=k: jax.random.uniform(kk, shape, jnp.float32, -s, s)

    p = {
        # LSTM layer 0 (weights stored pre-transposed as (in, 4H); gate order i,f,g,o)
        "w_ih0": u(keys[0], (D, 4 * H)),
        "w_hh0": u(keys[1], (H, 4 * H)),
        "b0":    u(keys[2], (1, 4 * H)) + u(keys[3], (1, 4 * H)),   # b_ih + b_hh
        # LSTM layer 1
        "w_ih1": u(keys[4], (H, 4 * H)),
        "w_hh1": u(keys[5], (H, 4 * H)),
        "b1":    u(keys[6], (1, 4 * H)) + u(keys[7], (1, 4 * H)),
        # fc
        "w_fc":  u(keys[8], (H, O)),
        "b_fc":  u(keys[9], (1, O)),
        # BatchNorm1d(seq_len) — affine params + running stats (eval-mode BN)
        "bn_g":  1.0 + 0.1 * jax.random.normal(keys[10], (S, 1), jnp.float32),
        "bn_b":  0.1 * jax.random.normal(keys[11], (S, 1), jnp.float32),
        "bn_m":  0.1 * jax.random.normal(keys[12], (S, 1), jnp.float32),
        "bn_v":  1.0 + 0.1 * jax.random.uniform(keys[13], (S, 1), jnp.float32),
    }
    return p


if __name__ == "__main__":
    # Small shapes consistent with the module's forward:
    # batch=2, seq_len=8, input_dim=4, hidden_dim=32, output_dim=4, 2 LSTM layers.
    B, S, D_IN, H, O = 2, 8, 4, 32, 4

    root = jax.random.PRNGKey(0)
    kx, kp = jax.random.split(root)
    x = jax.random.normal(kx, (B, S, D_IN), jnp.float32)
    params = make_params(kp, D_IN, H, O, S)

    out = lstm_forward(x, params)
    out = jax.block_until_ready(out)

    ref = jax.block_until_ready(ref_forward(x, params))
    assert out.shape == (B, O)
    if not jnp.allclose(out, ref, atol=2e-3, rtol=2e-3):
        raise AssertionError(f"mismatch: pallas={out}, ref={ref}")

    print("KERNEL_OK")
</pallas_src>

<mosaic_0001>
module attributes {stable_mosaic.version = 11 : i64} {
  func.func @_lstm_kernel(%arg0: i32, %arg1: memref<64x4xf32, #tpu.memory_space<vmem>>, %arg2: memref<64x1xf32, #tpu.memory_space<vmem>>, %arg3: memref<64x1xf32, #tpu.memory_space<vmem>>, %arg4: memref<4x128xf32, #tpu.memory_space<vmem>>, %arg5: memref<32x128xf32, #tpu.memory_space<vmem>>, %arg6: memref<1x128xf32, #tpu.memory_space<vmem>>, %arg7: memref<32x128xf32, #tpu.memory_space<vmem>>, %arg8: memref<32x128xf32, #tpu.memory_space<vmem>>, %arg9: memref<1x128xf32, #tpu.memory_space<vmem>>, %arg10: memref<32x4xf32, #tpu.memory_space<vmem>>, %arg11: memref<1x4xf32, #tpu.memory_space<vmem>>, %arg12: memref<2x4xf32, #tpu.memory_space<vmem>>, %arg13: memref<64x128xf32, #tpu.memory_space<vmem>>, %arg14: memref<64x32xf32, #tpu.memory_space<vmem>>) attributes {dimension_semantics = [#tpu.dimension_semantics<arbitrary>], iteration_bounds = array<i64: 1>, scalar_prefetch = 0 : i64, scratch_operands = 2 : i64, tpu.core_type = #tpu.core_type<tc>, window_params = [{pipeline_mode = #tpu.pipeline_mode<synchronous>, transform_indices = @transform_0, window_bounds = array<i64: 64, 4>}, {pipeline_mode = #tpu.pipeline_mode<synchronous>, transform_indices = @transform_1, window_bounds = array<i64: 64, 1>}, {pipeline_mode = #tpu.pipeline_mode<synchronous>, transform_indices = @transform_2, window_bounds = array<i64: 64, 1>}, {pipeline_mode = #tpu.pipeline_mode<synchronous>, transform_indices = @transform_3, window_bounds = array<i64: 4, 128>}, {pipeline_mode = #tpu.pipeline_mode<synchronous>, transform_indices = @transform_4, window_bounds = array<i64: 32, 128>}, {pipeline_mode = #tpu.pipeline_mode<synchronous>, transform_indices = @transform_5, window_bounds = array<i64: 1, 128>}, {pipeline_mode = #tpu.pipeline_mode<synchronous>, transform_indices = @transform_6, window_bounds = array<i64: 32, 128>}, {pipeline_mode = #tpu.pipeline_mode<synchronous>, transform_indices = @transform_7, window_bounds = array<i64: 32, 128>}, {pipeline_mode = #tpu.pipeline_mode<synchronous>, transform_indices = @transform_8, window_bounds = array<i64: 1, 128>}, {pipeline_mode = #tpu.pipeline_mode<synchronous>, transform_indices = @transform_9, window_bounds = array<i64: 32, 4>}, {pipeline_mode = #tpu.pipeline_mode<synchronous>, transform_indices = @transform_10, window_bounds = array<i64: 1, 4>}, {pipeline_mode = #tpu.pipeline_mode<synchronous>, transform_indices = @transform_11, window_bounds = array<i64: 2, 4>}]} {
    %c0 = arith.constant 0 : index
    %c0_0 = arith.constant 0 : index
    %0 = vector.load %arg4[%c0, %c0_0] : memref<4x128xf32, #tpu.memory_space<vmem>>, vector<4x128xf32>
    %c0_1 = arith.constant 0 : index
    %c0_2 = arith.constant 0 : index
    %1 = vector.load %arg1[%c0_1, %c0_2] : memref<64x4xf32, #tpu.memory_space<vmem>>, vector<64x4xf32>
    %cst = arith.constant dense<0.000000e+00> : vector<64x128xf32>
    %2 = tpu.matmul %1, %0, %cst {dimension_numbers = #tpu.dot_dimension_numbers<[1], [0], [0], [1], [0, 0, 1, 1], [], []>} : vector<64x4xf32>, vector<4x128xf32>, vector<64x128xf32> -> vector<64x128xf32>
    %cst_3 = arith.constant dense<0.000000e+00> : vector<128xf32>
    %3 = vector.multi_reduction <add>, %0, %cst_3 [0] : vector<4x128xf32> to vector<128xf32>
    %4 = vector.shape_cast %3 : vector<128xf32> to vector<1x128xf32>
    %c0_4 = arith.constant 0 : index
    %c0_5 = arith.constant 0 : index
    %5 = vector.load %arg2[%c0_4, %c0_5] : memref<64x1xf32, #tpu.memory_space<vmem>>, vector<64x1xf32>
    %6 = vector.broadcast %5 : vector<64x1xf32> to vector<64x128xf32>
    %7 = arith.mulf %6, %2 : vector<64x128xf32>
    %c0_6 = arith.constant 0 : index
    %c0_7 = arith.constant 0 : index
    %8 = vector.load %arg3[%c0_6, %c0_7] : memref<64x1xf32, #tpu.memory_space<vmem>>, vector<64x1xf32>
    %9 = vector.broadcast %8 : vector<64x1xf32> to vector<64x128xf32>
    %10 = vector.broadcast %4 : vector<1x128xf32> to vector<64x128xf32>
    %11 = arith.mulf %9, %10 : vector<64x128xf32>
    %12 = arith.addf %7, %11 : vector<64x128xf32>
    %c0_8 = arith.constant 0 : index
    %c0_9 = arith.constant 0 : index
    %13 = vector.load %arg6[%c0_8, %c0_9] : memref<1x128xf32, #tpu.memory_space<vmem>>, vector<1x128xf32>
    %14 = vector.broadcast %13 : vector<1x128xf32> to vector<64x128xf32>
    %15 = arith.addf %12, %14 : vector<64x128xf32>
    %c0_10 = arith.constant 0 : index
    %c0_11 = arith.constant 0 : index
    %16 = vector.load %arg13[%c0_10, %c0_11] : memref<64x128xf32, #tpu.memory_space<vmem>>, vector<64x128xf32>
    tpu.vector_store %arg13[%c0_10, %c0_11], %15 {strides = array<i32>} : memref<64x128xf32, #tpu.memory_space<vmem>>, vector<64x128xf32>,
    %c0_12 = arith.constant 0 : index
    %c0_13 = arith.constant 0 : index
    %17 = vector.load %arg5[%c0_12, %c0_13] : memref<32x128xf32, #tpu.memory_space<vmem>>, vector<32x128xf32>
    %cst_14 = arith.constant 0.000000e+00 : f32
    %18 = vector.broadcast %cst_14 : f32 to vector<8x32xf32>
    %cst_15 = arith.constant 0.000000e+00 : f32
    %19 = vector.broadcast %cst_15 : f32 to vector<8x32xf32>
    %c0_16 = arith.constant 0 : index
    %c0_17 = arith.constant 0 : index
    %20 = vector.load %arg13[%c0_16, %c0_17] : memref<64x128xf32, #tpu.memory_space<vmem>>, vector<8x128xf32>
    %cst_18 = arith.constant dense<0.000000e+00> : vector<8x128xf32>
    %21 = tpu.matmul %18, %17, %cst_18 {dimension_numbers = #tpu.dot_dimension_numbers<[1], [0], [0], [1], [0, 0, 1, 1], [], []>} : vector<8x32xf32>, vector<32x128xf32>, vector<8x128xf32> -> vector<8x128xf32>
    %22 = arith.addf %20, %21 : vector<8x128xf32>
    %23 = arith.negf %22 : vector<8x128xf32>
    %24 = math.exp %23 : vector<8x128xf32>
    %cst_19 = arith.constant 1.000000e+00 : f32
    %25 = vector.broadcast %cst_19 : f32 to vector<8x128xf32>
    %26 = arith.addf %25, %24 : vector<8x128xf32>
    %27 = arith.divf %25, %26 : vector<8x128xf32>
    %28 = math.tanh %22 : vector<8x128xf32>
    %29 = vector.extract_strided_slice %27 {offsets = [0, 0], sizes = [8, 32], strides = [1, 1]} : vector<8x128xf32> to vector<8x32xf32>
    %30 = vector.extract_strided_slice %27 {offsets = [0, 32], sizes = [8, 32], strides = [1, 1]} : vector<8x128xf32> to vector<8x32xf32>
    %31 = vector.extract_strided_slice %27 {offsets = [0, 96], sizes = [8, 32], strides = [1, 1]} : vector<8x128xf32> to vector<8x32xf32>
    %32 = vector.extract_strided_slice %28 {offsets = [0, 64], sizes = [8, 32], strides = [1, 1]} : vector<8x128xf32> to vector<8x32xf32>
    %33 = arith.mulf %30, %19 : vector<8x32xf32>
    %34 = arith.mulf %29, %32 : vector<8x32xf32>
    %35 = arith.addf %33, %34 : vector<8x32xf32>
    %36 = math.tanh %35 : vector<8x32xf32>
    %37 = arith.mulf %31, %36 : vector<8x32xf32>
    %c0_20 = arith.constant 0 : index
    %c0_21 = arith.constant 0 : index
    %38 = vector.load %arg14[%c0_20, %c0_21] : memref<64x32xf32, #tpu.memory_space<vmem>>, vector<8x32xf32>
    tpu.vector_store %arg14[%c0_20, %c0_21], %37 {strides = array<i32>} : memref<64x32xf32, #tpu.memory_space<vmem>>, vector<8x32xf32>,
    %c8 = arith.constant 8 : index
    %c0_22 = arith.constant 0 : index
    %39 = vector.load %arg13[%c8, %c0_22] : memref<64x128xf32, #tpu.memory_space<vmem>>, vector<8x128xf32>
    %cst_23 = arith.constant dense<0.000000e+00> : vector<8x128xf32>
    %40 = tpu.matmul %37, %17, %cst_23 {dimension_numbers = #tpu.dot_dimension_numbers<[1], [0], [0], [1], [0, 0, 1, 1], [], []>} : vector<8x32xf32>, vector<32x128xf32>, vector<8x128xf32> -> vector<8x128xf32>
    %41 = arith.addf %39, %40 : vector<8x128xf32>
    %42 = arith.negf %41 : vector<8x128xf32>
    %43 = math.exp %42 : vector<8x128xf32>
    %cst_24 = arith.constant 1.000000e+00 : f32
    %44 = vector.broadcast %cst_24 : f32 to vector<8x128xf32>
    %45 = arith.addf %44, %43 : vector<8x128xf32>
    %46 = arith.divf %44, %45 : vector<8x128xf32>
    %47 = math.tanh %41 : vector<8x128xf32>
    %48 = vector.extract_strided_slice %46 {offsets = [0, 0], sizes = [8, 32], strides = [1, 1]} : vector<8x128xf32> to vector<8x32xf32>
    %49 = vector.extract_strided_slice %46 {offsets = [0, 32], sizes = [8, 32], strides = [1, 1]} : vector<8x128xf32> to vector<8x32xf32>
    %50 = vector.extract_strided_slice %46 {offsets = [0, 96], sizes = [8, 32], strides = [1, 1]} : vector<8x128xf32> to vector<8x32xf32>
    %51 = vector.extract_strided_slice %47 {offsets = [0, 64], sizes = [8, 32], strides = [1, 1]} : vector<8x128xf32> to vector<8x32xf32>
    %52 = arith.mulf %49, %35 : vector<8x32xf32>
    %53 = arith.mulf %48, %51 : vector<8x32xf32>
    %54 = arith.addf %52, %53 : vector<8x32xf32>
    %55 = math.tanh %54 : vector<8x32xf32>
    %56 = arith.mulf %50, %55 : vector<8x32xf32>
    %c8_25 = arith.constant 8 : index
    %c0_26 = arith.constant 0 : index
    %57 = vector.load %arg14[%c8_25, %c0_26] : memref<64x32xf32, #tpu.memory_space<vmem>>, vector<8x32xf32>
    tpu.vector_store %arg14[%c8_25, %c0_26], %56 {strides = array<i32>} : memref<64x32xf32, #tpu.memory_space<vmem>>, vector<8x32xf32>,
    %c16 = arith.constant 16 : index
    %c0_27 = arith.constant 0 : index
    %58 = vector.load %arg13[%c16, %c0_27] : memref<64x128xf32, #tpu.memory_space<vmem>>, vector<8x128xf32>
    %cst_28 = arith.constant dense<0.000000e+00> : vector<8x128xf32>
    %59 = tpu.matmul %56, %17, %cst_28 {dimension_numbers = #tpu.dot_dimension_numbers<[1], [0], [0], [1], [0, 0, 1, 1], [], []>} : vector<8x32xf32>, vector<32x128xf32>, vector<8x128xf32> -> vector<8x128xf32>
    %60 = arith.addf %58, %59 : vector<8x128xf32>
    %61 = arith.negf %60 : vector<8x128xf32>
    %62 = math.exp %61 : vector<8x128xf32>
    %cst_29 = arith.constant 1.000000e+00 : f32
    %63 = vector.broadcast %cst_29 : f32 to vector<8x128xf32>
    %64 = arith.addf %63, %62 : vector<8x128xf32>
    %65 = arith.divf %63, %64 : vector<8x128xf32>
    %66 = math.tanh %60 : vector<8x128xf32>
    %67 = vector.extract_strided_slice %65 {offsets = [0, 0], sizes = [8, 32], strides = [1, 1]} : vector<8x128xf32> to vector<8x32xf32>
    %68 = vector.extract_strided_slice %65 {offsets = [0, 32], sizes = [8, 32], strides = [1, 1]} : vector<8x128xf32> to vector<8x32xf32>
    %69 = vector.extract_strided_slice %65 {offsets = [0, 96], sizes = [8, 32], strides = [1, 1]} : vector<8x128xf32> to vector<8x32xf32>
    %70 = vector.extract_strided_slice %66 {offsets = [0, 64], sizes = [8, 32], strides = [1, 1]} : vector<8x128xf32> to vector<8x32xf32>
    %71 = arith.mulf %68, %54 : vector<8x32xf32>
    %72 = arith.mulf %67, %70 : vector<8x32xf32>
    %73 = arith.addf %71, %72 : vector<8x32xf32>
    %74 = math.tanh %73 : vector<8x32xf32>
    %75 = arith.mulf %69, %74 : vector<8x32xf32>
    %c16_30 = arith.constant 16 : index
    %c0_31 = arith.constant 0 : index
    %76 = vector.load %arg14[%c16_30, %c0_31] : memref<64x32xf32, #tpu.memory_space<vmem>>, vector<8x32xf32>
    tpu.vector_store %arg14[%c16_30, %c0_31], %75 {strides = array<i32>} : memref<64x32xf32, #tpu.memory_space<vmem>>, vector<8x32xf32>,
    %c24 = arith.constant 24 : index
    %c0_32 = arith.constant 0 : index
    %77 = vector.load %arg13[%c24, %c0_32] : memref<64x128xf32, #tpu.memory_space<vmem>>, vector<8x128xf32>
    %cst_33 = arith.constant dense<0.000000e+00> : vector<8x128xf32>
    %78 = tpu.matmul %75, %17, %cst_33 {dimension_numbers = #tpu.dot_dimension_numbers<[1], [0], [0], [1], [0, 0, 1, 1], [], []>} : vector<8x32xf32>, vector<32x128xf32>, vector<8x128xf32> -> vector<8x128xf32>
    %79 = arith.addf %77, %78 : vector<8x128xf32>
    %80 = arith.negf %79 : vector<8x128xf32>
    %81 = math.exp %80 : vector<8x128xf32>
    %cst_34 = arith.constant 1.000000e+00 : f32
    %82 = vector.broadcast %cst_34 : f32 to vector<8x128xf32>
    %83 = arith.addf %82, %81 : vector<8x128xf32>
    %84 = arith.divf %82, %83 : vector<8x128xf32>
    %85 = math.tanh %79 : vector<8x128xf32>
    %86 = vector.extract_strided_slice %84 {offsets = [0, 0], sizes = [8, 32], strides = [1, 1]} : vector<8x128xf32> to vector<8x32xf32>
    %87 = vector.extract_strided_slice %84 {offsets = [0, 32], sizes = [8, 32], strides = [1, 1]} : vector<8x128xf32> to vector<8x32xf32>
    %88 = vector.extract_strided_slice %84 {offsets = [0, 96], sizes = [8, 32], strides = [1, 1]} : vector<8x128xf32> to vector<8x32xf32>
    %89 = vector.extract_strided_slice %85 {offsets = [0, 64], sizes = [8, 32], strides = [1, 1]} : vector<8x128xf32> to vector<8x32xf32>
    %90 = arith.mulf %87, %73 : vector<8x32xf32>
    %91 = arith.mulf %86, %89 : vector<8x32xf32>
    %92 = arith.addf %90, %91 : vector<8x32xf32>
    %93 = math.tanh %92 : vector<8x32xf32>
    %94 = arith.mulf %88, %93 : vector<8x32xf32>
    %c24_35 = arith.constant 24 : index
    %c0_36 = arith.constant 0 : index
    %95 = vector.load %arg14[%c24_35, %c0_36] : memref<64x32xf32, #tpu.memory_space<vmem>>, vector<8x32xf32>
    tpu.vector_store %arg14[%c24_35, %c0_36], %94 {strides = array<i32>} : memref<64x32xf32, #tpu.memory_space<vmem>>, vector<8x32xf32>,
    %c32 = arith.constant 32 : index
    %c0_37 = arith.constant 0 : index
    %96 = vector.load %arg13[%c32, %c0_37] : memref<64x128xf32, #tpu.memory_space<vmem>>, vector<8x128xf32>
    %cst_38 = arith.constant dense<0.000000e+00> : vector<8x128xf32>
    %97 = tpu.matmul %94, %17, %cst_38 {dimension_numbers = #tpu.dot_dimension_numbers<[1], [0], [0], [1], [0, 0, 1, 1], [], []>} : vector<8x32xf32>, vector<32x128xf32>, vector<8x128xf32> -> vector<8x128xf32>
    %98 = arith.addf %96, %97 : vector<8x128xf32>
    %99 = arith.negf %98 : vector<8x128xf32>
    %100 = math.exp %99 : vector<8x128xf32>
    %cst_39 = arith.constant 1.000000e+00 : f32
    %101 = vector.broadcast %cst_39 : f32 to vector<8x128xf32>
    %102 = arith.addf %101, %100 : vector<8x128xf32>
    %103 = arith.divf %101, %102 : vector<8x128xf32>
    %104 = math.tanh %98 : vector<8x128xf32>
    %105 = vector.extract_strided_slice %103 {offsets = [0, 0], sizes = [8, 32], strides = [1, 1]} : vector<8x128xf32> to vector<8x32xf32>
    %106 = vector.extract_strided_slice %103 {offsets = [0, 32], sizes = [8, 32], strides = [1, 1]} : vector<8x128xf32> to vector<8x32xf32>
    %107 = vector.extract_strided_slice %103 {offsets = [0, 96], sizes = [8, 32], strides = [1, 1]} : vector<8x128xf32> to vector<8x32xf32>
    %108 = vector.extract_strided_slice %104 {offsets = [0, 64], sizes = [8, 32], strides = [1, 1]} : vector<8x128xf32> to vector<8x32xf32>
    %109 = arith.mulf %106, %92 : vector<8x32xf32>
    %110 = arith.mulf %105, %108 : vector<8x32xf32>
    %111 = arith.addf %109, %110 : vector<8x32xf32>
    %112 = math.tanh %111 : vector<8x32xf32>
    %113 = arith.mulf %107, %112 : vector<8x32xf32>
    %c32_40 = arith.constant 32 : index
    %c0_41 = arith.constant 0 : index
    %114 = vector.load %arg14[%c32_40, %c0_41] : memref<64x32xf32, #tpu.memory_space<vmem>>, vector<8x32xf32>
    tpu.vector_store %arg14[%c32_40, %c0_41], %113 {strides = array<i32>} : memref<64x32xf32, #tpu.memory_space<vmem>>, vector<8x32xf32>,
    %c40 = arith.constant 40 : index
    %c0_42 = arith.constant 0 : index
    %115 = vector.load %arg13[%c40, %c0_42] : memref<64x128xf32, #tpu.memory_space<vmem>>, vector<8x128xf32>
    %cst_43 = arith.constant dense<0.000000e+00> : vector<8x128xf32>
    %116 = tpu.matmul %113, %17, %cst_43 {dimension_numbers = #tpu.dot_dimension_numbers<[1], [0], [0], [1], [0, 0, 1, 1], [], []>} : vector<8x32xf32>, vector<32x128xf32>, vector<8x128xf32> -> vector<8x128xf32>
    %117 = arith.addf %115, %116 : vector<8x128xf32>
    %118 = arith.negf %117 : vector<8x128xf32>
    %119 = math.exp %118 : vector<8x128xf32>
    %cst_44 = arith.constant 1.000000e+00 : f32
    %120 = vector.broadcast %cst_44 : f32 to vector<8x128xf32>
    %121 = arith.addf %120, %119 : vector<8x128xf32>
    %122 = arith.divf %120, %121 : vector<8x128xf32>
    %123 = math.tanh %117 : vector<8x128xf32>
    %124 = vector.extract_strided_slice %122 {offsets = [0, 0], sizes = [8, 32], strides = [1, 1]} : vector<8x128xf32> to vector<8x32xf32>
    %125 = vector.extract_strided_slice %122 {offsets = [0, 32], sizes = [8, 32], strides = [1, 1]} : vector<8x128xf32> to vector<8x32xf32>
    %126 = vector.extract_strided_slice %122 {offsets = [0, 96], sizes = [8, 32], strides = [1, 1]} : vector<8x128xf32> to vector<8x32xf32>
    %127 = vector.extract_strided_slice %123 {offsets = [0, 64], sizes = [8, 32], strides = [1, 1]} : vector<8x128xf32> to vector<8x32xf32>
    %128 = arith.mulf %125, %111 : vector<8x32xf32>
    %129 = arith.mulf %124, %127 : vector<8x32xf32>
    %130 = arith.addf %128, %129 : vector<8x32xf32>
    %131 = math.tanh %130 : vector<8x32xf32>
    %132 = arith.mulf %126, %131 : vector<8x32xf32>
    %c40_45 = arith.constant 40 : index
    %c0_46 = arith.constant 0 : index
    %133 = vector.load %arg14[%c40_45, %c0_46] : memref<64x32xf32, #tpu.memory_space<vmem>>, vector<8x32xf32>
    tpu.vector_store %arg14[%c40_45, %c0_46], %132 {strides = array<i32>} : memref<64x32xf32, #tpu.memory_space<vmem>>, vector<8x32xf32>,
    %c48 = arith.constant 48 : index
    %c0_47 = arith.constant 0 : index
    %134 = vector.load %arg13[%c48, %c0_47] : memref<64x128xf32, #tpu.memory_space<vmem>>, vector<8x128xf32>
    %cst_48 = arith.constant dense<0.000000e+00> : vector<8x128xf32>
    %135 = tpu.matmul %132, %17, %cst_48 {dimension_numbers = #tpu.dot_dimension_numbers<[1], [0], [0], [1], [0, 0, 1, 1], [], []>} : vector<8x32xf32>, vector<32x128xf32>, vector<8x128xf32> -> vector<8x128xf32>
    %136 = arith.addf %134, %135 : vector<8x128xf32>
    %137 = arith.negf %136 : vector<8x128xf32>
    %138 = math.exp %137 : vector<8x128xf32>
    %cst_49 = arith.constant 1.000000e+00 : f32
    %139 = vector.broadcast %cst_49 : f32 to vector<8x128xf32>
    %140 = arith.addf %139, %138 : vector<8x128xf32>
    %141 = arith.divf %139, %140 : vector<8x128xf32>
    %142 = math.tanh %136 : vector<8x128xf32>
    %143 = vector.extract_strided_slice %141 {offsets = [0, 0], sizes = [8, 32], strides = [1, 1]} : vector<8x128xf32> to vector<8x32xf32>
    %144 = vector.extract_strided_slice %141 {offsets = [0, 32], sizes = [8, 32], strides = [1, 1]} : vector<8x128xf32> to vector<8x32xf32>
    %145 = vector.extract_strided_slice %141 {offsets = [0, 96], sizes = [8, 32], strides = [1, 1]} : vector<8x128xf32> to vector<8x32xf32>
    %146 = vector.extract_strided_slice %142 {offsets = [0, 64], sizes = [8, 32], strides = [1, 1]} : vector<8x128xf32> to vector<8x32xf32>
    %147 = arith.mulf %144, %130 : vector<8x32xf32>
    %148 = arith.mulf %143, %146 : vector<8x32xf32>
    %149 = arith.addf %147, %148 : vector<8x32xf32>
    %150 = math.tanh %149 : vector<8x32xf32>
    %151 = arith.mulf %145, %150 : vector<8x32xf32>
    %c48_50 = arith.constant 48 : index
    %c0_51 = arith.constant 0 : index
    %152 = vector.load %arg14[%c48_50, %c0_51] : memref<64x32xf32, #tpu.memory_space<vmem>>, vector<8x32xf32>
    tpu.vector_store %arg14[%c48_50, %c0_51], %151 {strides = array<i32>} : memref<64x32xf32, #tpu.memory_space<vmem>>, vector<8x32xf32>,
    %c56 = arith.constant 56 : index
    %c0_52 = arith.constant 0 : index
    %153 = vector.load %arg13[%c56, %c0_52] : memref<64x128xf32, #tpu.memory_space<vmem>>, vector<8x128xf32>
    %cst_53 = arith.constant dense<0.000000e+00> : vector<8x128xf32>
    %154 = tpu.matmul %151, %17, %cst_53 {dimension_numbers = #tpu.dot_dimension_numbers<[1], [0], [0], [1], [0, 0, 1, 1], [], []>} : vector<8x32xf32>, vector<32x128xf32>, vector<8x128xf32> -> vector<8x128xf32>
    %155 = arith.addf %153, %154 : vector<8x128xf32>
    %156 = arith.negf %155 : vector<8x128xf32>
    %157 = math.exp %156 : vector<8x128xf32>
    %cst_54 = arith.constant 1.000000e+00 : f32
    %158 = vector.broadcast %cst_54 : f32 to vector<8x128xf32>
    %159 = arith.addf %158, %157 : vector<8x128xf32>
    %160 = arith.divf %158, %159 : vector<8x128xf32>
    %161 = math.tanh %155 : vector<8x128xf32>
    %162 = vector.extract_strided_slice %160 {offsets = [0, 0], sizes = [8, 32], strides = [1, 1]} : vector<8x128xf32> to vector<8x32xf32>
    %163 = vector.extract_strided_slice %160 {offsets = [0, 32], sizes = [8, 32], strides = [1, 1]} : vector<8x128xf32> to vector<8x32xf32>
    %164 = vector.extract_strided_slice %160 {offsets = [0, 96], sizes = [8, 32], strides = [1, 1]} : vector<8x128xf32> to vector<8x32xf32>
    %165 = vector.extract_strided_slice %161 {offsets = [0, 64], sizes = [8, 32], strides = [1, 1]} : vector<8x128xf32> to vector<8x32xf32>
    %166 = arith.mulf %163, %149 : vector<8x32xf32>
    %167 = arith.mulf %162, %165 : vector<8x32xf32>
    %168 = arith.addf %166, %167 : vector<8x32xf32>
    %169 = math.tanh %168 : vector<8x32xf32>
    %170 = arith.mulf %164, %169 : vector<8x32xf32>
    %c56_55 = arith.constant 56 : index
    %c0_56 = arith.constant 0 : index
    %171 = vector.load %arg14[%c56_55, %c0_56] : memref<64x32xf32, #tpu.memory_space<vmem>>, vector<8x32xf32>
    tpu.vector_store %arg14[%c56_55, %c0_56], %170 {strides = array<i32>} : memref<64x32xf32, #tpu.memory_space<vmem>>, vector<8x32xf32>,
    %c0_57 = arith.constant 0 : index
    %c0_58 = arith.constant 0 : index
    %172 = vector.load %arg14[%c0_57, %c0_58] : memref<64x32xf32, #tpu.memory_space<vmem>>, vector<64x32xf32>
    %c0_59 = arith.constant 0 : index
    %c0_60 = arith.constant 0 : index
    %173 = vector.load %arg7[%c0_59, %c0_60] : memref<32x128xf32, #tpu.memory_space<vmem>>, vector<32x128xf32>
    %cst_61 = arith.constant dense<0.000000e+00> : vector<64x128xf32>
    %174 = tpu.matmul %172, %173, %cst_61 {dimension_numbers = #tpu.dot_dimension_numbers<[1], [0], [0], [1], [0, 0, 1, 1], [], []>} : vector<64x32xf32>, vector<32x128xf32>, vector<64x128xf32> -> vector<64x128xf32>
    %c0_62 = arith.constant 0 : index
    %c0_63 = arith.constant 0 : index
    %175 = vector.load %arg9[%c0_62, %c0_63] : memref<1x128xf32, #tpu.memory_space<vmem>>, vector<1x128xf32>
    %176 = vector.broadcast %175 : vector<1x128xf32> to vector<64x128xf32>
    %177 = arith.addf %174, %176 : vector<64x128xf32>
    %c0_64 = arith.constant 0 : index
    %c0_65 = arith.constant 0 : index
    %178 = vector.load %arg13[%c0_64, %c0_65] : memref<64x128xf32, #tpu.memory_space<vmem>>, vector<64x128xf32>
    tpu.vector_store %arg13[%c0_64, %c0_65], %177 {strides = array<i32>} : memref<64x128xf32, #tpu.memory_space<vmem>>, vector<64x128xf32>,
    %c0_66 = arith.constant 0 : index
    %c0_67 = arith.constant 0 : index
    %179 = vector.load %arg8[%c0_66, %c0_67] : memref<32x128xf32, #tpu.memory_space<vmem>>, vector<32x128xf32>
    %cst_68 = arith.constant 0.000000e+00 : f32
    %180 = vector.broadcast %cst_68 : f32 to vector<8x32xf32>
    %cst_69 = arith.constant 0.000000e+00 : f32
    %181 = vector.broadcast %cst_69 : f32 to vector<8x32xf32>
    %c0_70 = arith.constant 0 : index
    %c0_71 = arith.constant 0 : index
    %182 = vector.load %arg13[%c0_70, %c0_71] : memref<64x128xf32, #tpu.memory_space<vmem>>, vector<8x128xf32>
    %cst_72 = arith.constant dense<0.000000e+00> : vector<8x128xf32>
    %183 = tpu.matmul %180, %179, %cst_72 {dimension_numbers = #tpu.dot_dimension_numbers<[1], [0], [0], [1], [0, 0, 1, 1], [], []>} : vector<8x32xf32>, vector<32x128xf32>, vector<8x128xf32> -> vector<8x128xf32>
    %184 = arith.addf %182, %183 : vector<8x128xf32>
    %185 = arith.negf %184 : vector<8x128xf32>
    %186 = math.exp %185 : vector<8x128xf32>
    %cst_73 = arith.constant 1.000000e+00 : f32
    %187 = vector.broadcast %cst_73 : f32 to vector<8x128xf32>
    %188 = arith.addf %187, %186 : vector<8x128xf32>
    %189 = arith.divf %187, %188 : vector<8x128xf32>
    %190 = math.tanh %184 : vector<8x128xf32>
    %191 = vector.extract_strided_slice %189 {offsets = [0, 0], sizes = [8, 32], strides = [1, 1]} : vector<8x128xf32> to vector<8x32xf32>
    %192 = vector.extract_strided_slice %189 {offsets = [0, 32], sizes = [8, 32], strides = [1, 1]} : vector<8x128xf32> to vector<8x32xf32>
    %193 = vector.extract_strided_slice %189 {offsets = [0, 96], sizes = [8, 32], strides = [1, 1]} : vector<8x128xf32> to vector<8x32xf32>
    %194 = vector.extract_strided_slice %190 {offsets = [0, 64], sizes = [8, 32], strides = [1, 1]} : vector<8x128xf32> to vector<8x32xf32>
    %195 = arith.mulf %192, %181 : vector<8x32xf32>
    %196 = arith.mulf %191, %194 : vector<8x32xf32>
    %197 = arith.addf %195, %196 : vector<8x32xf32>
    %198 = math.tanh %197 : vector<8x32xf32>
    %199 = arith.mulf %193, %198 : vector<8x32xf32>
    %c8_74 = arith.constant 8 : index
    %c0_75 = arith.constant 0 : index
    %200 = vector.load %arg13[%c8_74, %c0_75] : memref<64x128xf32, #tpu.memory_space<vmem>>, vector<8x128xf32>
    %cst_76 = arith.constant dense<0.000000e+00> : vector<8x128xf32>
    %201 = tpu.matmul %199, %179, %cst_76 {dimension_numbers = #tpu.dot_dimension_numbers<[1], [0], [0], [1], [0, 0, 1, 1], [], []>} : vector<8x32xf32>, vector<32x128xf32>, vector<8x128xf32> -> vector<8x128xf32>
    %202 = arith.addf %200, %201 : vector<8x128xf32>
    %203 = arith.negf %202 : vector<8x128xf32>
    %204 = math.exp %203 : vector<8x128xf32>
    %cst_77 = arith.constant 1.000000e+00 : f32
    %205 = vector.broadcast %cst_77 : f32 to vector<8x128xf32>
    %206 = arith.addf %205, %204 : vector<8x128xf32>
    %207 = arith.divf %205, %206 : vector<8x128xf32>
    %208 = math.tanh %202 : vector<8x128xf32>
    %209 = vector.extract_strided_slice %207 {offsets = [0, 0], sizes = [8, 32], strides = [1, 1]} : vector<8x128xf32> to vector<8x32xf32>
    %210 = vector.extract_strided_slice %207 {offsets = [0, 32], sizes = [8, 32], strides = [1, 1]} : vector<8x128xf32> to vector<8x32xf32>
    %211 = vector.extract_strided_slice %207 {offsets = [0, 96], sizes = [8, 32], strides = [1, 1]} : vector<8x128xf32> to vector<8x32xf32>
    %212 = vector.extract_strided_slice %208 {offsets = [0, 64], sizes = [8, 32], strides = [1, 1]} : vector<8x128xf32> to vector<8x32xf32>
    %213 = arith.mulf %210, %197 : vector<8x32xf32>
    %214 = arith.mulf %209, %212 : vector<8x32xf32>
    %215 = arith.addf %213, %214 : vector<8x32xf32>
    %216 = math.tanh %215 : vector<8x32xf32>
    %217 = arith.mulf %211, %216 : vector<8x32xf32>
    %c16_78 = arith.constant 16 : index
    %c0_79 = arith.constant 0 : index
    %218 = vector.load %arg13[%c16_78, %c0_79] : memref<64x128xf32, #tpu.memory_space<vmem>>, vector<8x128xf32>
    %cst_80 = arith.constant dense<0.000000e+00> : vector<8x128xf32>
    %219 = tpu.matmul %217, %179, %cst_80 {dimension_numbers = #tpu.dot_dimension_numbers<[1], [0], [0], [1], [0, 0, 1, 1], [], []>} : vector<8x32xf32>, vector<32x128xf32>, vector<8x128xf32> -> vector<8x128xf32>
    %220 = arith.addf %218, %219 : vector<8x128xf32>
    %221 = arith.negf %220 : vector<8x128xf32>
    %222 = math.exp %221 : vector<8x128xf32>
    %cst_81 = arith.constant 1.000000e+00 : f32
    %223 = vector.broadcast %cst_81 : f32 to vector<8x128xf32>
    %224 = arith.addf %223, %222 : vector<8x128xf32>
    %225 = arith.divf %223, %224 : vector<8x128xf32>
    %226 = math.tanh %220 : vector<8x128xf32>
    %227 = vector.extract_strided_slice %225 {offsets = [0, 0], sizes = [8, 32], strides = [1, 1]} : vector<8x128xf32> to vector<8x32xf32>
    %228 = vector.extract_strided_slice %225 {offsets = [0, 32], sizes = [8, 32], strides = [1, 1]} : vector<8x128xf32> to vector<8x32xf32>
    %229 = vector.extract_strided_slice %225 {offsets = [0, 96], sizes = [8, 32], strides = [1, 1]} : vector<8x128xf32> to vector<8x32xf32>
    %230 = vector.extract_strided_slice %226 {offsets = [0, 64], sizes = [8, 32], strides = [1, 1]} : vector<8x128xf32> to vector<8x32xf32>
    %231 = arith.mulf %228, %215 : vector<8x32xf32>
    %232 = arith.mulf %227, %230 : vector<8x32xf32>
    %233 = arith.addf %231, %232 : vector<8x32xf32>
    %234 = math.tanh %233 : vector<8x32xf32>
    %235 = arith.mulf %229, %234 : vector<8x32xf32>
    %c24_82 = arith.constant 24 : index
    %c0_83 = arith.constant 0 : index
    %236 = vector.load %arg13[%c24_82, %c0_83] : memref<64x128xf32, #tpu.memory_space<vmem>>, vector<8x128xf32>
    %cst_84 = arith.constant dense<0.000000e+00> : vector<8x128xf32>
    %237 = tpu.matmul %235, %179, %cst_84 {dimension_numbers = #tpu.dot_dimension_numbers<[1], [0], [0], [1], [0, 0, 1, 1], [], []>} : vector<8x32xf32>, vector<32x128xf32>, vector<8x128xf32> -> vector<8x128xf32>
    %238 = arith.addf %236, %237 : vector<8x128xf32>
    %239 = arith.negf %238 : vector<8x128xf32>
    %240 = math.exp %239 : vector<8x128xf32>
    %cst_85 = arith.constant 1.000000e+00 : f32
    %241 = vector.broadcast %cst_85 : f32 to vector<8x128xf32>
    %242 = arith.addf %241, %240 : vector<8x128xf32>
    %243 = arith.divf %241, %242 : vector<8x128xf32>
    %244 = math.tanh %238 : vector<8x128xf32>
    %245 = vector.extract_strided_slice %243 {offsets = [0, 0], sizes = [8, 32], strides = [1, 1]} : vector<8x128xf32> to vector<8x32xf32>
    %246 = vector.extract_strided_slice %243 {offsets = [0, 32], sizes = [8, 32], strides = [1, 1]} : vector<8x128xf32> to vector<8x32xf32>
    %247 = vector.extract_strided_slice %243 {offsets = [0, 96], sizes = [8, 32], strides = [1, 1]} : vector<8x128xf32> to vector<8x32xf32>
    %248 = vector.extract_strided_slice %244 {offsets = [0, 64], sizes = [8, 32], strides = [1, 1]} : vector<8x128xf32> to vector<8x32xf32>
    %249 = arith.mulf %246, %233 : vector<8x32xf32>
    %250 = arith.mulf %245, %248 : vector<8x32xf32>
    %251 = arith.addf %249, %250 : vector<8x32xf32>
    %252 = math.tanh %251 : vector<8x32xf32>
    %253 = arith.mulf %247, %252 : vector<8x32xf32>
    %c32_86 = arith.constant 32 : index
    %c0_87 = arith.constant 0 : index
    %254 = vector.load %arg13[%c32_86, %c0_87] : memref<64x128xf32, #tpu.memory_space<vmem>>, vector<8x128xf32>
    %cst_88 = arith.constant dense<0.000000e+00> : vector<8x128xf32>
    %255 = tpu.matmul %253, %179, %cst_88 {dimension_numbers = #tpu.dot_dimension_numbers<[1], [0], [0], [1], [0, 0, 1, 1], [], []>} : vector<8x32xf32>, vector<32x128xf32>, vector<8x128xf32> -> vector<8x128xf32>
    %256 = arith.addf %254, %255 : vector<8x128xf32>
    %257 = arith.negf %256 : vector<8x128xf32>
    %258 = math.exp %257 : vector<8x128xf32>
    %cst_89 = arith.constant 1.000000e+00 : f32
    %259 = vector.broadcast %cst_89 : f32 to vector<8x128xf32>
    %260 = arith.addf %259, %258 : vector<8x128xf32>
    %261 = arith.divf %259, %260 : vector<8x128xf32>
    %262 = math.tanh %256 : vector<8x128xf32>
    %263 = vector.extract_strided_slice %261 {offsets = [0, 0], sizes = [8, 32], strides = [1, 1]} : vector<8x128xf32> to vector<8x32xf32>
    %264 = vector.extract_strided_slice %261 {offsets = [0, 32], sizes = [8, 32], strides = [1, 1]} : vector<8x128xf32> to vector<8x32xf32>
    %265 = vector.extract_strided_slice %261 {offsets = [0, 96], sizes = [8, 32], strides = [1, 1]} : vector<8x128xf32> to vector<8x32xf32>
    %266 = vector.extract_strided_slice %262 {offsets = [0, 64], sizes = [8, 32], strides = [1, 1]} : vector<8x128xf32> to vector<8x32xf32>
    %267 = arith.mulf %264, %251 : vector<8x32xf32>
    %268 = arith.mulf %263, %266 : vector<8x32xf32>
    %269 = arith.addf %267, %268 : vector<8x32xf32>
    %270 = math.tanh %269 : vector<8x32xf32>
    %271 = arith.mulf %265, %270 : vector<8x32xf32>
    %c40_90 = arith.constant 40 : index
    %c0_91 = arith.constant 0 : index
    %272 = vector.load %arg13[%c40_90, %c0_91] : memref<64x128xf32, #tpu.memory_space<vmem>>, vector<8x128xf32>
    %cst_92 = arith.constant dense<0.000000e+00> : vector<8x128xf32>
    %273 = tpu.matmul %271, %179, %cst_92 {dimension_numbers = #tpu.dot_dimension_numbers<[1], [0], [0], [1], [0, 0, 1, 1], [], []>} : vector<8x32xf32>, vector<32x128xf32>, vector<8x128xf32> -> vector<8x128xf32>
    %274 = arith.addf %272, %273 : vector<8x128xf32>
    %275 = arith.negf %274 : vector<8x128xf32>
    %276 = math.exp %275 : vector<8x128xf32>
    %cst_93 = arith.constant 1.000000e+00 : f32
    %277 = vector.broadcast %cst_93 : f32 to vector<8x128xf32>
    %278 = arith.addf %277, %276 : vector<8x128xf32>
    %279 = arith.divf %277, %278 : vector<8x128xf32>
    %280 = math.tanh %274 : vector<8x128xf32>
    %281 = vector.extract_strided_slice %279 {offsets = [0, 0], sizes = [8, 32], strides = [1, 1]} : vector<8x128xf32> to vector<8x32xf32>
    %282 = vector.extract_strided_slice %279 {offsets = [0, 32], sizes = [8, 32], strides = [1, 1]} : vector<8x128xf32> to vector<8x32xf32>
    %283 = vector.extract_strided_slice %279 {offsets = [0, 96], sizes = [8, 32], strides = [1, 1]} : vector<8x128xf32> to vector<8x32xf32>
    %284 = vector.extract_strided_slice %280 {offsets = [0, 64], sizes = [8, 32], strides = [1, 1]} : vector<8x128xf32> to vector<8x32xf32>
    %285 = arith.mulf %282, %269 : vector<8x32xf32>
    %286 = arith.mulf %281, %284 : vector<8x32xf32>
    %287 = arith.addf %285, %286 : vector<8x32xf32>
    %288 = math.tanh %287 : vector<8x32xf32>
    %289 = arith.mulf %283, %288 : vector<8x32xf32>
    %c48_94 = arith.constant 48 : index
    %c0_95 = arith.constant 0 : index
    %290 = vector.load %arg13[%c48_94, %c0_95] : memref<64x128xf32, #tpu.memory_space<vmem>>, vector<8x128xf32>
    %cst_96 = arith.constant dense<0.000000e+00> : vector<8x128xf32>
    %291 = tpu.matmul %289, %179, %cst_96 {dimension_numbers = #tpu.dot_dimension_numbers<[1], [0], [0], [1], [0, 0, 1, 1], [], []>} : vector<8x32xf32>, vector<32x128xf32>, vector<8x128xf32> -> vector<8x128xf32>
    %292 = arith.addf %290, %291 : vector<8x128xf32>
    %293 = arith.negf %292 : vector<8x128xf32>
    %294 = math.exp %293 : vector<8x128xf32>
    %cst_97 = arith.constant 1.000000e+00 : f32
    %295 = vector.broadcast %cst_97 : f32 to vector<8x128xf32>
    %296 = arith.addf %295, %294 : vector<8x128xf32>
    %297 = arith.divf %295, %296 : vector<8x128xf32>
    %298 = math.tanh %292 : vector<8x128xf32>
    %299 = vector.extract_strided_slice %297 {offsets = [0, 0], sizes = [8, 32], strides = [1, 1]} : vector<8x128xf32> to vector<8x32xf32>
    %300 = vector.extract_strided_slice %297 {offsets = [0, 32], sizes = [8, 32], strides = [1, 1]} : vector<8x128xf32> to vector<8x32xf32>
    %301 = vector.extract_strided_slice %297 {offsets = [0, 96], sizes = [8, 32], strides = [1, 1]} : vector<8x128xf32> to vector<8x32xf32>
    %302 = vector.extract_strided_slice %298 {offsets = [0, 64], sizes = [8, 32], strides = [1, 1]} : vector<8x128xf32> to vector<8x32xf32>
    %303 = arith.mulf %300, %287 : vector<8x32xf32>
    %304 = arith.mulf %299, %302 : vector<8x32xf32>
    %305 = arith.addf %303, %304 : vector<8x32xf32>
    %306 = math.tanh %305 : vector<8x32xf32>
    %307 = arith.mulf %301, %306 : vector<8x32xf32>
    %c56_98 = arith.constant 56 : index
    %c0_99 = arith.constant 0 : index
    %308 = vector.load %arg13[%c56_98, %c0_99] : memref<64x128xf32, #tpu.memory_space<vmem>>, vector<8x128xf32>
    %cst_100 = arith.constant dense<0.000000e+00> : vector<8x128xf32>
    %309 = tpu.matmul %307, %179, %cst_100 {dimension_numbers = #tpu.dot_dimension_numbers<[1], [0], [0], [1], [0, 0, 1, 1], [], []>} : vector<8x32xf32>, vector<32x128xf32>, vector<8x128xf32> -> vector<8x128xf32>
    %310 = arith.addf %308, %309 : vector<8x128xf32>
    %311 = arith.negf %310 : vector<8x128xf32>
    %312 = math.exp %311 : vector<8x128xf32>
    %cst_101 = arith.constant 1.000000e+00 : f32
    %313 = vector.broadcast %cst_101 : f32 to vector<8x128xf32>
    %314 = arith.addf %313, %312 : vector<8x128xf32>
    %315 = arith.divf %313, %314 : vector<8x128xf32>
    %316 = math.tanh %310 : vector<8x128xf32>
    %317 = vector.extract_strided_slice %315 {offsets = [0, 0], sizes = [8, 32], strides = [1, 1]} : vector<8x128xf32> to vector<8x32xf32>
    %318 = vector.extract_strided_slice %315 {offsets = [0, 32], sizes = [8, 32], strides = [1, 1]} : vector<8x128xf32> to vector<8x32xf32>
    %319 = vector.extract_strided_slice %315 {offsets = [0, 96], sizes = [8, 32], strides = [1, 1]} : vector<8x128xf32> to vector<8x32xf32>
    %320 = vector.extract_strided_slice %316 {offsets = [0, 64], sizes = [8, 32], strides = [1, 1]} : vector<8x128xf32> to vector<8x32xf32>
    %321 = arith.mulf %318, %305 : vector<8x32xf32>
    %322 = arith.mulf %317, %320 : vector<8x32xf32>
    %323 = arith.addf %321, %322 : vector<8x32xf32>
    %324 = math.tanh %323 : vector<8x32xf32>
    %325 = arith.mulf %319, %324 : vector<8x32xf32>
    %c0_102 = arith.constant 0 : index
    %c0_103 = arith.constant 0 : index
    %326 = vector.load %arg10[%c0_102, %c0_103] : memref<32x4xf32, #tpu.memory_space<vmem>>, vector<32x4xf32>
    %cst_104 = arith.constant dense<0.000000e+00> : vector<8x4xf32>
    %327 = tpu.matmul %325, %326, %cst_104 {dimension_numbers = #tpu.dot_dimension_numbers<[1], [0], [0], [1], [0, 0, 1, 1], [], []>} : vector<8x32xf32>, vector<32x4xf32>, vector<8x4xf32> -> vector<8x4xf32>
    %c0_105 = arith.constant 0 : index
    %c0_106 = arith.constant 0 : index
    %328 = vector.load %arg11[%c0_105, %c0_106] : memref<1x4xf32, #tpu.memory_space<vmem>>, vector<1x4xf32>
    %329 = vector.broadcast %328 : vector<1x4xf32> to vector<8x4xf32>
    %330 = arith.addf %327, %329 : vector<8x4xf32>
    %331 = vector.extract_strided_slice %330 {offsets = [0, 0], sizes = [2, 4], strides = [1, 1]} : vector<8x4xf32> to vector<2x4xf32>
    %c0_107 = arith.constant 0 : index
    %c0_108 = arith.constant 0 : index
    %332 = vector.load %arg12[%c0_107, %c0_108] : memref<2x4xf32, #tpu.memory_space<vmem>>, vector<2x4xf32>
    tpu.vector_store %arg12[%c0_107, %c0_108], %331 {strides = array<i32>} : memref<2x4xf32, #tpu.memory_space<vmem>>, vector<2x4xf32>,
    return
  }
  func.func @transform_0(%arg0: i32) -> (i32, i32) {
    %c0_i32 = arith.constant 0 : i32
    %c0_i32_0 = arith.constant 0 : i32
    %c0_i32_1 = arith.constant 0 : i32
    return %c0_i32, %c0_i32_0 : i32, i32
  }
  func.func @transform_1(%arg0: i32) -> (i32, i32) {
    %c0_i32 = arith.constant 0 : i32
    %c0_i32_0 = arith.constant 0 : i32
    %c0_i32_1 = arith.constant 0 : i32
    return %c0_i32, %c0_i32_0 : i32, i32
  }
  func.func @transform_2(%arg0: i32) -> (i32, i32) {
    %c0_i32 = arith.constant 0 : i32
    %c0_i32_0 = arith.constant 0 : i32
    %c0_i32_1 = arith.constant 0 : i32
    return %c0_i32, %c0_i32_0 : i32, i32
  }
  func.func @transform_3(%arg0: i32) -> (i32, i32) {
    %c0_i32 = arith.constant 0 : i32
    %c0_i32_0 = arith.constant 0 : i32
    %c0_i32_1 = arith.constant 0 : i32
    return %c0_i32, %c0_i32_0 : i32, i32
  }
  func.func @transform_4(%arg0: i32) -> (i32, i32) {
    %c0_i32 = arith.constant 0 : i32
    %c0_i32_0 = arith.constant 0 : i32
    %c0_i32_1 = arith.constant 0 : i32
    return %c0_i32, %c0_i32_0 : i32, i32
  }
  func.func @transform_5(%arg0: i32) -> (i32, i32) {
    %c0_i32 = arith.constant 0 : i32
    %c0_i32_0 = arith.constant 0 : i32
    %c0_i32_1 = arith.constant 0 : i32
    return %c0_i32, %c0_i32_0 : i32, i32
  }
  func.func @transform_6(%arg0: i32) -> (i32, i32) {
    %c0_i32 = arith.constant 0 : i32
    %c0_i32_0 = arith.constant 0 : i32
    %c0_i32_1 = arith.constant 0 : i32
    return %c0_i32, %c0_i32_0 : i32, i32
  }
  func.func @transform_7(%arg0: i32) -> (i32, i32) {
    %c0_i32 = arith.constant 0 : i32
    %c0_i32_0 = arith.constant 0 : i32
    %c0_i32_1 = arith.constant 0 : i32
    return %c0_i32, %c0_i32_0 : i32, i32
  }
  func.func @transform_8(%arg0: i32) -> (i32, i32) {
    %c0_i32 = arith.constant 0 : i32
    %c0_i32_0 = arith.constant 0 : i32
    %c0_i32_1 = arith.constant 0 : i32
    return %c0_i32, %c0_i32_0 : i32, i32
  }
  func.func @transform_9(%arg0: i32) -> (i32, i32) {
    %c0_i32 = arith.constant 0 : i32
    %c0_i32_0 = arith.constant 0 : i32
    %c0_i32_1 = arith.constant 0 : i32
    return %c0_i32, %c0_i32_0 : i32, i32
  }
  func.func @transform_10(%arg0: i32) -> (i32, i32) {
    %c0_i32 = arith.constant 0 : i32
    %c0_i32_0 = arith.constant 0 : i32
    %c0_i32_1 = arith.constant 0 : i32
    return %c0_i32, %c0_i32_0 : i32, i32
  }
  func.func @transform_11(%arg0: i32) -> (i32, i32) {
    %c0_i32 = arith.constant 0 : i32
    %c0_i32_0 = arith.constant 0 : i32
    %c0_i32_1 = arith.constant 0 : i32
    return %c0_i32, %c0_i32_0 : i32, i32
  }
}

</mosaic_0001>

<bundles_post_ra>
// kernel: tpu_custom_call.1
= control target key start
LH: loop header
LB: loop body
LE: loop exit
PB: predicated region body
PF: predicated region fallthrough
CT: control target
= control target key end

     0   :  { %vm73_vm0 = vcmask 1043456   ;;  %vm48_vm1 = vcmask 31744   ;;  %v2876_v6 = vmov 0.0|0.0   ;;  %vm2877_vm2 = vmmov 0   ;;  %s3374_s0 = inlined_call_operand.vmem [shape: f32[64,4], index: 0, kind: input, shape index: {}]   ;;  %s3375_s1 = inlined_call_operand.vmem [shape: f32[64,1], index: 1, kind: input, shape index: {}]   ;;  %s3376_s2 = inlined_call_operand.vmem [shape: f32[64,1], index: 2, kind: input, shape index: {}]   ;;  %s3377_s3 = inlined_call_operand.vmem [shape: f32[4,128], index: 3, kind: input, shape index: {}]   ;;  %s3378_s4 = inlined_call_operand.vmem [shape: f32[32,128], index: 4, kind: input, shape index: {}]   ;;  %s3379_s5 = inlined_call_operand.vmem [shape: f32[1,128], index: 5, kind: input, shape index: {}]   ;;  %s3380_s6 = inlined_call_operand.vmem [shape: f32[32,128], index: 6, kind: input, shape index: {}]   ;;  %s3381_s7 = inlined_call_operand.vmem [shape: f32[32,128], index: 7, kind: input, shape index: {}]   ;;  %s3382_s8 = inlined_call_operand.vmem [shape: f32[1,128], index: 8, kind: input, shape index: {}]   ;;  %s3383_s9 = inlined_call_operand.vmem [shape: f32[32,4], index: 9, kind: input, shape index: {}]   ;;  %s3384_s10 = inlined_call_operand.vmem [shape: f32[1,4], index: 10, kind: input, shape index: {}]   ;;  %s3385_s11 = inlined_call_operand.hbm [shape: f32[2,4], index: 11, kind: output, shape index: {}]  }
   0x1   :  { %v39_v0 = vld [vmem:[%s3377_s3] sm:$0xf]  ;;  %v41_v3 = vld [vmem:[%s3374_s0 + $0x8] sm:$0xff]  ;;  %2605 = vmatprep.subr.bf16.mxu1 %v2876_v6  ;;  %v334_v8 = vld [vmem:[%s3378_s4 + $0x10] sm:$0xff]  ;;  %v2878_v11 = vmov 0.0  }
   0x2   :  { %v40_v1 = vld [vmem:[%s3374_s0] sm:$0xff]  ;;  %2384 = vmatprep.subr.msk.mxu0 %vm73_vm0, %v39_v0  ;;  %v182_v2 = vsel %vm73_vm0, %v39_v0, 0.0  ;;  %v333_v5 = vld [vmem:[%s3378_s4 + $0x8] sm:$0xff]  ;;  %v335_v9 = vld [vmem:[%s3378_s4 + $0x18] sm:$0xff]  ;;  %2406 = vmatprep.mubr.msk.f32.mxu1 %vm2877_vm2, %v2878_v11 }
   0x3   :  { %2386 = vmatprep.mubr.msk.f32.mxu0 %vm48_vm1, %v40_v1  ;;  %v332_v4 = vld [vmem:[%s3378_s4] sm:$0xff]  ;;  %2385 = vmatpush3.msk.msra.mxu0 %vm73_vm0, %v39_v0 }
   0x4   :  { %v2960_v7 = vpack.c.bf16 %v333_v5, %v332_v4  ;;  %v189_v10 = vld [vmem:[%s3375_s1] sm:$0xff]  ;;  %2387 = vmatmul.mubr.msk.f32.vlgmr.msra.gmra.mrb[0].mxu0 %vm48_vm1, %v41_v3 }
   0x5   :  { %16 = vsyncpa [#allocation5], 0  ;;  %v2975_v12 = vpack.c.bf16 %v335_v9, %v334_v8  ;;  %v2879_v13 = vmov 0   ;;  %v245_v14 = vld [vmem:[%s3376_s2] sm:$0xff]  ;;  %2617 = vmatprep.subr.bf16.mxu0 %v2876_v6  ;;  %v183_v15 = vrot.slane %v182_v2, 4  ;;  %s2880_s16 = smov 64  }
   0x6   :  { %2607 = vmatpush3.bf16.msra.mxu1 %v2960_v7  ;;  %2722 = vset.pattern.permute.xlu0 %v2879_v13  ;;  %v3001_v27 = vld [vmem:[%s3379_s5] ss:$0 sm:$0xff]  ;;  %s2881_s5 = smov 32   ;;  %v190_v44 = vld [vmem:[%s3375_s1 + $0x8] sm:$0xff]  ;;  %vm337_vm3 = vcmask 261120   ;;  %v42_v58 = vld [vmem:[%s3374_s0 + $0x10] sm:$0xff] }
   0x7   :  { %2608 = vmatprep.subr.bf16.mxu1 %v2876_v6  ;;  %199 = vperm.xlu0 %2722, %v189_v10   ;;  %v184_v16 = vadd.f32 %v183_v15, %v182_v2  ;;  %v246_v47 = vld [vmem:[%s3376_s2 + $0x8] sm:$0xff]  ;;  %v43_v59 = vld [vmem:[%s3374_s0 + $0x18] sm:$0xff]  ;;  %v191_v10 = vld [vmem:[%s3375_s1 + $0x10] sm:$0xff]  ;;  %vm2211_vm4 = vcmask 25600  }
   0x8   :  { %2723 = vset.pattern.permute.xlu1 %v2879_v13  ;;  %2619 = vmatpush3.bf16.msra.mxu0 %v2960_v7  ;;  %v45_v15 = vld [vmem:[%s3374_s0 + $0x28] sm:$0xff] }
   0x9   :  { %2620 = vmatprep.subr.bf16.mxu0 %v2876_v6  ;;  %v185_v17 = vrot.slane %v184_v16, 2  ;;  %2389 = vmatprep.mubr.msk.f32.mxu0 %vm48_vm1, %v42_v58 }
   0xa   :  { %2610 = vmatpush3.bf16.msra.mxu1 %v2975_v12  ;;  %2390 = vmatmul.mubr.msk.f32.gmra.mrb[2].mxu0 %vm48_vm1, %v43_v59 }
   0xb   :  { %255 = vperm.xlu0 %2722, %v245_v14   ;;  %2611 = vmatprep.subr.bf16.mxu1 %v2876_v6  ;;  %v186_v18 = vadd.f32 %v185_v17, %v184_v16  ;;  %v44_v14 = vld [vmem:[%s3374_s0 + $0x20] sm:$0xff]  ;;  %v46_v16 = vld [vmem:[%s3374_s0 + $0x30] sm:$0xff]  ;;  %v47_v17 = vld [vmem:[%s3374_s0 + $0x38] sm:$0xff] }
   0xc   :  { %2622 = vmatpush3.bf16.msra.mxu0 %v2975_v12  ;;  %2392 = vmatprep.mubr.msk.f32.mxu0 %vm48_vm1, %v44_v14 }
   0xd   :  { %2407 = vmatmul.mubr.f32.vlgmr.msra.gmra.mrb[0].mxu1 %v2878_v11  ;;  %2629 = vmatprep.subr.bf16.mxu0 %v2876_v6  ;;  %v187_v20 = vrot.slane %v186_v18, 1 }
   0xe   :  { %2613 = vmatpush3.bf16.msra.mxu1 %v2960_v7  ;;  %2417 = vmatprep.mubr.msk.f32.mxu1 %vm2877_vm2, %v2878_v11 }
   0xf   :  { %2614 = vmatprep.subr.bf16.mxu1 %v2876_v6  ;;  %v2995_v21 = vadd.f32 %v187_v20, %v186_v18  ;;  %2393 = vmatmul.mubr.msk.f32.gmra.mrb[4].mxu0 %vm48_vm1, %v45_v15  ;;  %v247_v20 = vld [vmem:[%s3376_s2 + $0x10] sm:$0xff] }
  0x10   :  { %2395 = vmatprep.mubr.msk.f32.mxu0 %vm48_vm1, %v46_v16  ;;  %v249_v16 = vld [vmem:[%s3376_s2 + $0x20] sm:$0xff] }
  0x12   :  { %2616 = vmatpush3.bf16.msra.mxu1 %v2975_v12 }
  0x13   :  { %2623 = vmatprep.subr.bf16.mxu1 %v2876_v6  ;;  %2396 = vmatmul.mubr.msk.f32.gmra.mrb[6].mxu0 %vm48_vm1, %v47_v17 }
  0x14   :  { %2428 = vmatprep.mubr.msk.f32.mxu0 %vm2877_vm2, %v2878_v11 }
  0x86   :  { %v200_v19 = vpop.permute.xlu0 %199 }
  0x8a   :  { %v256_v22 = vpop.permute.xlu0 %255 }
  0x8b   :  { %v293_v25 = vmul.f32 %v256_v22, %v2995_v21 }
  0xd7   :  { %v2388_v23 = vpop.f32.mrb[0].mxu0 }
  0xd8   :  { %v143_v24 = vpop.f32.mrb[1].mxu0 }
  0xd9   :  { %v237_v26 = vmul.f32 %v200_v19, %v143_v24 }
  0xdb   :  { %v301_v28 = vadd.f32 %v293_v25, %v237_v26 }
  0xdd   :  { %v316_v29 = vadd.f32 %v3001_v27, %v301_v28  ;;  %v3034_v8 = vpop.f32.mrb[2].mxu0 }
  0xde   :  { %v153_v13 = vpop.f32.mrb[3].mxu0 }
  0xe0   :  { %v407_v30 = vpop.f32.mrb[0].mxu1 }
  0xe1   :  { %v411_v31 = vadd.f32 %v407_v30, %v316_v29  ;;  %v2408_v32 = vpop.f32.mrb[1].mxu1 }
  0xe2   :  { %v3062_v22 = vpop.f32.mrb[4].mxu0 }
  0xe3   :  { %2724 = vtanh.f32 %v411_v31  ;;  %v2237_v34 = vmul.f32 -1.442695, %v411_v31 }
  0xe5   :  { %2726 = vpow2.f32 %v2237_v34 }
  0xed   :  { %v2725_v33 = vpop.eup %2724 }
  0xee   :  { %421 = vrot.lane.b32.xlu1 %v2725_v33, %s2880_s16 }
  0xef   :  { %v2727_v35 = vpop.eup %2726 }
  0xf0   :  { %v415_v36 = vadd.f32 1.0, %v2727_v35 }
  0xf2   :  { %2728 = vrcp.f32 %v415_v36 }
  0xfc   :  { %v2729_v37 = vpop.eup %2728 }
  0xfd   :  { %v419_v40 = vmul.f32 0.0, %v2729_v37 }
 0x160   :  { %v422_v38 = vpop.permute.xlu1 %421 }
 0x161   :  { %v424_v39 = vmul.f32 %v2729_v37, %v422_v38 }
 0x163   :  { %426 = vrot.lane.b32.xlu1 %v424_v39, %s2881_s5 }
 0x1d5   :  { %v427_v41 = vpop.permute.xlu1 %426 }
 0x1d6   :  { %v429_v42 = vadd.f32 %v427_v41, %v419_v40 }
 0x1d8   :  { %2730 = vtanh.f32 %v429_v42 }
 0x1e2   :  { %v2731_v43 = vpop.eup %2730 }
 0x1e3   :  { %432 = vrot.lane.b32.xlu0 %v2731_v43, %s2880_s16 }
 0x1e7   :  { %204 = vperm.xlu0 %2722, %v190_v44  }
 0x255   :  { %v433_v45 = vpop.permute.xlu0 %432 }
 0x256   :  { %v435_v46 = vmul.f32 %v2729_v37, %v433_v45 }
 0x258   :  { %437 = vrot.lane.b32.xlu1 %v435_v46, %s2881_s5 }
 0x25c   :  { %260 = vperm.xlu1 %2723, %v246_v47  }
 0x266   :  { %v205_v50 = vpop.permute.xlu0 %204 }
 0x267   :  { %v238_v52 = vmul.f32 %v2388_v23, %v205_v50  ;;  %v3064_v23 = vpop.f32.mrb[5].mxu0 }
 0x268   :  { %v3066_v24 = vpop.f32.mrb[6].mxu0 }
 0x269   :  { %v3068_v25 = vpop.f32.mrb[7].mxu0 }
 0x2ca   :  { %v438_v48 = vpop.permute.xlu1 %437 }
 0x2cb   :  { %440 = vst.msk [vmem:[#allocation3] sm:$0xff] %vm337_vm3, %v438_v48  ;;  %2418 = vmatmul.mubr.msk.f32.vlgmr.msra.gmra.mrb[2].mxu1 %vm337_vm3, %v438_v48  ;;  %v192_v48 = vld [vmem:[%s3375_s1 + $0x18] sm:$0xff] }
 0x2cc   :  { %2625 = vmatpush3.bf16.msra.mxu1 %v2960_v7  ;;  %2439 = vmatprep.mubr.msk.f32.mxu1 %vm2877_vm2, %v2878_v11 }
 0x2cd   :  { %2626 = vmatprep.subr.bf16.mxu1 %v2876_v6 }
 0x2d0   :  { %2628 = vmatpush3.bf16.msra.mxu1 %v2975_v12 }
 0x2d1   :  { %2635 = vmatprep.subr.bf16.mxu1 %v2876_v6 }
 0x2db   :  { %v261_v49 = vpop.permute.xlu1 %260 }
 0x2dc   :  { %v294_v51 = vmul.f32 %v261_v49, %v2995_v21 }
 0x2de   :  { %v302_v53 = vadd.f32 %v294_v51, %v238_v52  ;;  %v248_v51 = vld [vmem:[%s3376_s2 + $0x18] sm:$0xff] }
 0x2e0   :  { %v317_v54 = vadd.f32 %v3001_v27, %v302_v53 }
 0x39e   :  { %v510_v55 = vpop.f32.mrb[2].mxu1 }
 0x39f   :  { %v514_v56 = vadd.f32 %v510_v55, %v317_v54  ;;  %v2419_v57 = vpop.f32.mrb[3].mxu1 }
 0x3a1   :  { %2732 = vtanh.f32 %v514_v56  ;;  %v2239_v61 = vmul.f32 -1.442695, %v514_v56 }
 0x3a3   :  { %2734 = vpow2.f32 %v2239_v61 }
 0x3ab   :  { %v2733_v60 = vpop.eup %2732 }
 0x3ac   :  { %524 = vrot.lane.b32.xlu0 %v2733_v60, %s2880_s16 }
 0x3ad   :  { %v2735_v62 = vpop.eup %2734 }
 0x3ae   :  { %v518_v63 = vadd.f32 1.0, %v2735_v62 }
 0x3b0   :  { %2736 = vrcp.f32 %v518_v63 }
 0x3ba   :  { %v2737_v0 = vpop.eup %2736 }
 0x3bb   :  { %v522_v3 = vmul.f32 %v2737_v0, %v429_v42 }
 0x41e   :  { %v525_v1 = vpop.permute.xlu0 %524 }
 0x41f   :  { %v527_v2 = vmul.f32 %v2737_v0, %v525_v1 }
 0x421   :  { %529 = vrot.lane.b32.xlu1 %v527_v2, %s2881_s5 }
 0x493   :  { %v530_v4 = vpop.permute.xlu1 %529 }
 0x494   :  { %v532_v5 = vadd.f32 %v530_v4, %v522_v3 }
 0x496   :  { %2738 = vtanh.f32 %v532_v5 }
 0x4a0   :  { %v2739_v9 = vpop.eup %2738 }
 0x4a1   :  { %535 = vrot.lane.b32.xlu0 %v2739_v9, %s2880_s16 }
 0x4a5   :  { %209 = vperm.xlu0 %2722, %v191_v10  }
 0x513   :  { %v536_v18 = vpop.permute.xlu0 %535 }
 0x514   :  { %v538_v19 = vmul.f32 %v2737_v0, %v536_v18 }
 0x516   :  { %540 = vrot.lane.b32.xlu1 %v538_v19, %s2881_s5 }
 0x51a   :  { %265 = vperm.xlu1 %2723, %v247_v20  }
 0x524   :  { %v210_v29 = vpop.permute.xlu0 %209 }
 0x525   :  { %v239_v31 = vmul.f32 %v210_v29, %v153_v13  ;;  %v193_v13 = vld [vmem:[%s3375_s1 + $0x20] sm:$0xff] }
 0x588   :  { %v541_v26 = vpop.permute.xlu1 %540 }
 0x589   :  { %543 = vst.msk [vmem:[#allocation3 + $0x8] sm:$0xff] %vm337_vm3, %v541_v26  ;;  %2429 = vmatmul.mubr.msk.f32.vlgmr.msra.gmra.mrb[8].mxu0 %vm337_vm3, %v541_v26 }
 0x58a   :  { %2631 = vmatpush3.bf16.msra.mxu0 %v2960_v7  ;;  %2450 = vmatprep.mubr.msk.f32.mxu0 %vm2877_vm2, %v2878_v11 }
 0x58b   :  { %2632 = vmatprep.subr.bf16.mxu0 %v2876_v6 }
 0x58e   :  { %2634 = vmatpush3.bf16.msra.mxu0 %v2975_v12 }
 0x58f   :  { %2641 = vmatprep.subr.bf16.mxu0 %v2876_v6 }
 0x599   :  { %v266_v28 = vpop.permute.xlu1 %265 }
 0x59a   :  { %v295_v30 = vmul.f32 %v266_v28, %v2995_v21 }
 0x59c   :  { %v303_v32 = vadd.f32 %v295_v30, %v239_v31 }
 0x59e   :  { %v318_v33 = vadd.f32 %v3001_v27, %v303_v32 }
 0x65c   :  { %v613_v34 = vpop.f32.mrb[8].mxu0 }
 0x65d   :  { %v617_v35 = vadd.f32 %v613_v34, %v318_v33  ;;  %v2430_v36 = vpop.f32.mrb[9].mxu0 }
 0x65f   :  { %2740 = vtanh.f32 %v617_v35  ;;  %v2241_v38 = vmul.f32 -1.442695, %v617_v35 }
 0x661   :  { %2742 = vpow2.f32 %v2241_v38 }
 0x669   :  { %v2741_v37 = vpop.eup %2740 }
 0x66a   :  { %627 = vrot.lane.b32.xlu0 %v2741_v37, %s2880_s16 }
 0x66b   :  { %v2743_v39 = vpop.eup %2742 }
 0x66c   :  { %v621_v40 = vadd.f32 1.0, %v2743_v39 }
 0x66e   :  { %2744 = vrcp.f32 %v621_v40 }
 0x678   :  { %v2745_v41 = vpop.eup %2744 }
 0x679   :  { %v625_v44 = vmul.f32 %v2745_v41, %v532_v5 }
 0x6dc   :  { %v628_v42 = vpop.permute.xlu0 %627 }
 0x6dd   :  { %v630_v43 = vmul.f32 %v2745_v41, %v628_v42 }
 0x6df   :  { %632 = vrot.lane.b32.xlu1 %v630_v43, %s2881_s5  ;;  %v194_v43 = vld [vmem:[%s3375_s1 + $0x28] sm:$0xff] }
 0x751   :  { %v633_v45 = vpop.permute.xlu1 %632 }
 0x752   :  { %v635_v46 = vadd.f32 %v633_v45, %v625_v44 }
 0x754   :  { %2746 = vtanh.f32 %v635_v46 }
 0x75e   :  { %v2747_v47 = vpop.eup %2746 }
 0x75f   :  { %638 = vrot.lane.b32.xlu0 %v2747_v47, %s2880_s16 }
 0x763   :  { %214 = vperm.xlu0 %2722, %v192_v48  }
 0x7d1   :  { %v639_v49 = vpop.permute.xlu0 %638 }
 0x7d2   :  { %v641_v50 = vmul.f32 %v2745_v41, %v639_v49 }
 0x7d4   :  { %643 = vrot.lane.b32.xlu1 %v641_v50, %s2881_s5 }
 0x7d8   :  { %270 = vperm.xlu1 %2723, %v248_v51  }
 0x7e2   :  { %v215_v54 = vpop.permute.xlu0 %214 }
 0x7e3   :  { %v240_v56 = vmul.f32 %v3034_v8, %v215_v54 }
 0x846   :  { %v644_v52 = vpop.permute.xlu1 %643 }
 0x847   :  { %646 = vst.msk [vmem:[#allocation3 + $0x10] sm:$0xff] %vm337_vm3, %v644_v52  ;;  %2440 = vmatmul.mubr.msk.f32.vlgmr.msra.gmra.mrb[4].mxu1 %vm337_vm3, %v644_v52 }
 0x848   :  { %2637 = vmatpush3.bf16.msra.mxu1 %v2960_v7  ;;  %2461 = vmatprep.mubr.msk.f32.mxu1 %vm2877_vm2, %v2878_v11 }
 0x849   :  { %2638 = vmatprep.subr.bf16.mxu1 %v2876_v6 }
 0x84c   :  { %2640 = vmatpush3.bf16.msra.mxu1 %v2975_v12 }
 0x84d   :  { %2647 = vmatprep.subr.bf16.mxu1 %v2876_v6 }
 0x857   :  { %v271_v53 = vpop.permute.xlu1 %270 }
 0x858   :  { %v296_v55 = vmul.f32 %v271_v53, %v2995_v21 }
 0x85a   :  { %v304_v57 = vadd.f32 %v296_v55, %v240_v56 }
 0x85c   :  { %v319_v58 = vadd.f32 %v3001_v27, %v304_v57 }
 0x91a   :  { %v716_v59 = vpop.f32.mrb[4].mxu1 }
 0x91b   :  { %v720_v60 = vadd.f32 %v716_v59, %v319_v58  ;;  %v2441_v61 = vpop.f32.mrb[5].mxu1 }
 0x91d   :  { %2748 = vtanh.f32 %v720_v60  ;;  %v2243_v63 = vmul.f32 -1.442695, %v720_v60 }
 0x91f   :  { %2750 = vpow2.f32 %v2243_v63 }
 0x927   :  { %v2749_v62 = vpop.eup %2748 }
 0x928   :  { %730 = vrot.lane.b32.xlu0 %v2749_v62, %s2880_s16 }
 0x929   :  { %v2751_v0 = vpop.eup %2750 }
 0x92a   :  { %v724_v1 = vadd.f32 1.0, %v2751_v0 }
 0x92c   :  { %2752 = vrcp.f32 %v724_v1  ;;  %v195_v1 = vld [vmem:[%s3375_s1 + $0x30] sm:$0xff] }
 0x936   :  { %v2753_v2 = vpop.eup %2752 }
 0x937   :  { %v728_v5 = vmul.f32 %v2753_v2, %v635_v46  ;;  %v250_v46 = vld [vmem:[%s3376_s2 + $0x28] sm:$0xff] }
 0x99a   :  { %v731_v3 = vpop.permute.xlu0 %730 }
 0x99b   :  { %v733_v4 = vmul.f32 %v2753_v2, %v731_v3  ;;  %v1171_v3 = vld [vmem:[%s3380_s6 + $0x8] sm:$0xff] }
 0x99d   :  { %735 = vrot.lane.b32.xlu1 %v733_v4, %s2881_s5 }
 0xa0f   :  { %v736_v8 = vpop.permute.xlu1 %735 }
 0xa10   :  { %v738_v9 = vadd.f32 %v736_v8, %v728_v5 }
 0xa12   :  { %2754 = vtanh.f32 %v738_v9 }
 0xa1c   :  { %v2755_v10 = vpop.eup %2754 }
 0xa1d   :  { %741 = vrot.lane.b32.xlu0 %v2755_v10, %s2880_s16  ;;  %v1172_v10 = vld [vmem:[%s3380_s6 + $0x10] sm:$0xff] }
 0xa21   :  { %219 = vperm.xlu0 %2722, %v193_v13   ;;  %v1173_v13 = vld [vmem:[%s3380_s6 + $0x18] sm:$0xff] }
 0xa8f   :  { %v742_v14 = vpop.permute.xlu0 %741 }
 0xa90   :  { %v744_v15 = vmul.f32 %v2753_v2, %v742_v14  ;;  %v1170_v2 = vld [vmem:[%s3380_s6] sm:$0xff]  ;;  %v2657_v14 = vpack.c.bf16 %v1173_v13, %v1172_v10 }
 0xa91   :  { %v2653_v4 = vpack.c.bf16 %v1171_v3, %v1170_v2 }
 0xa92   :  { %746 = vrot.lane.b32.xlu1 %v744_v15, %s2881_s5 }
 0xa96   :  { %275 = vperm.xlu1 %2723, %v249_v16   ;;  %v1162_v16 = vld [vmem:[#allocation3] sm:$0xff] }
 0xaa0   :  { %v220_v19 = vpop.permute.xlu0 %219 }
 0xaa1   :  { %v241_v26 = vmul.f32 %v220_v19, %v3064_v23 }
 0xb04   :  { %v747_v17 = vpop.permute.xlu1 %746 }
 0xb05   :  { %749 = vst.msk [vmem:[#allocation3 + $0x18] sm:$0xff] %vm337_vm3, %v747_v17  ;;  %2451 = vmatmul.mubr.msk.f32.vlgmr.msra.gmra.mrb[10].mxu0 %vm337_vm3, %v747_v17  ;;  %v1163_v17 = vld [vmem:[#allocation3 + $0x8] sm:$0xff] }
 0xb06   :  { %2643 = vmatpush3.bf16.msra.mxu0 %v2960_v7  ;;  %2472 = vmatprep.mubr.msk.f32.mxu0 %vm2877_vm2, %v2878_v11 }
 0xb07   :  { %2644 = vmatprep.subr.bf16.mxu0 %v2876_v6 }
 0xb0a   :  { %2646 = vmatpush3.bf16.msra.mxu0 %v2975_v12 }
 0xb0b   :  { %2654 = vmatprep.subr.bf16.mxu0 %v2653_v4 }
 0xb0c   :  { %v1165_v19 = vld [vmem:[#allocation3 + $0x18] sm:$0xff] }
 0xb15   :  { %v276_v18 = vpop.permute.xlu1 %275 }
 0xb16   :  { %v297_v20 = vmul.f32 %v276_v18, %v2995_v21  ;;  %v1164_v18 = vld [vmem:[#allocation3 + $0x10] sm:$0xff] }
 0xb18   :  { %v305_v28 = vadd.f32 %v297_v20, %v241_v26 }
 0xb1a   :  { %v320_v29 = vadd.f32 %v3001_v27, %v305_v28 }
 0xbd8   :  { %v819_v30 = vpop.f32.mrb[10].mxu0 }
 0xbd9   :  { %v823_v31 = vadd.f32 %v819_v30, %v320_v29  ;;  %v2452_v32 = vpop.f32.mrb[11].mxu0 }
 0xbdb   :  { %2756 = vtanh.f32 %v823_v31  ;;  %v2245_v34 = vmul.f32 -1.442695, %v823_v31 }
 0xbdd   :  { %2758 = vpow2.f32 %v2245_v34 }
 0xbe5   :  { %v2757_v33 = vpop.eup %2756 }
 0xbe6   :  { %833 = vrot.lane.b32.xlu0 %v2757_v33, %s2880_s16 }
 0xbe7   :  { %v2759_v35 = vpop.eup %2758 }
 0xbe8   :  { %v827_v36 = vadd.f32 1.0, %v2759_v35 }
 0xbea   :  { %2760 = vrcp.f32 %v827_v36 }
 0xbf4   :  { %v2761_v37 = vpop.eup %2760 }
 0xbf5   :  { %v831_v23 = vmul.f32 %v2761_v37, %v738_v9  ;;  %v251_v9 = vld [vmem:[%s3376_s2 + $0x30] sm:$0xff] }
 0xc58   :  { %v834_v38 = vpop.permute.xlu0 %833 }
 0xc59   :  { %v836_v39 = vmul.f32 %v2761_v37, %v834_v38 }
 0xc5b   :  { %838 = vrot.lane.b32.xlu1 %v836_v39, %s2881_s5 }
 0xccd   :  { %v839_v40 = vpop.permute.xlu1 %838 }
 0xcce   :  { %v841_v41 = vadd.f32 %v839_v40, %v831_v23 }
 0xcd0   :  { %2762 = vtanh.f32 %v841_v41 }
 0xcda   :  { %v2763_v42 = vpop.eup %2762 }
 0xcdb   :  { %844 = vrot.lane.b32.xlu0 %v2763_v42, %s2880_s16 }
 0xcdf   :  { %224 = vperm.xlu0 %2722, %v194_v43  }
 0xd4d   :  { %v845_v44 = vpop.permute.xlu0 %844 }
 0xd4e   :  { %v847_v45 = vmul.f32 %v2761_v37, %v845_v44 }
 0xd50   :  { %849 = vrot.lane.b32.xlu1 %v847_v45, %s2881_s5 }
 0xd54   :  { %280 = vperm.xlu1 %2723, %v250_v46  }
 0xd5e   :  { %v225_v49 = vpop.permute.xlu0 %224 }
 0xd5f   :  { %v242_v51 = vmul.f32 %v3062_v22, %v225_v49 }
 0xdc2   :  { %v850_v47 = vpop.permute.xlu1 %849 }
 0xdc3   :  { %852 = vst.msk [vmem:[#allocation3 + $0x20] sm:$0xff] %vm337_vm3, %v850_v47  ;;  %2462 = vmatmul.mubr.msk.f32.vlgmr.msra.gmra.mrb[6].mxu1 %vm337_vm3, %v850_v47 }
 0xdc4   :  { %2649 = vmatpush3.bf16.msra.mxu1 %v2960_v7  ;;  %2483 = vmatprep.mubr.msk.f32.mxu1 %vm2877_vm2, %v2878_v11 }
 0xdc5   :  { %2650 = vmatprep.subr.bf16.mxu1 %v2876_v6 }
 0xdc8   :  { %2652 = vmatpush3.bf16.msra.mxu1 %v2975_v12 }
 0xdc9   :  { %2661 = vmatprep.subr.bf16.mxu1 %v2876_v6 }
 0xdca   :  { %v1166_v20 = vld [vmem:[#allocation3 + $0x20] sm:$0xff] }
 0xdd3   :  { %v281_v48 = vpop.permute.xlu1 %280 }
 0xdd4   :  { %v298_v50 = vmul.f32 %v281_v48, %v2995_v21 }
 0xdd6   :  { %v306_v52 = vadd.f32 %v298_v50, %v242_v51 }
 0xdd8   :  { %v321_v53 = vadd.f32 %v3001_v27, %v306_v52  ;;  %v1318_v52 = vld [vmem:[%s3381_s7] sm:$0xff] }
 0xe96   :  { %v922_v54 = vpop.f32.mrb[6].mxu1 }
 0xe97   :  { %v926_v7 = vadd.f32 %v922_v54, %v321_v53  ;;  %v2463_v55 = vpop.f32.mrb[7].mxu1  ;;  %v1319_v53 = vld [vmem:[%s3381_s7 + $0x8] sm:$0xff] }
 0xe98   :  { %v3202_v54 = vpack.c.bf16 %v1319_v53, %v1318_v52  ;;  %v1321_v55 = vld [vmem:[%s3381_s7 + $0x18] sm:$0xff] }
 0xe99   :  { %2764 = vtanh.f32 %v926_v7  ;;  %v2247_v57 = vmul.f32 -1.442695, %v926_v7  ;;  %v1320_v7 = vld [vmem:[%s3381_s7 + $0x10] sm:$0xff] }
 0xe9b   :  { %2766 = vpow2.f32 %v2247_v57 }
 0xea3   :  { %v2765_v56 = vpop.eup %2764 }
 0xea4   :  { %936 = vrot.lane.b32.xlu0 %v2765_v56, %s2880_s16  ;;  %v3212_v56 = vpack.c.bf16 %v1321_v55, %v1320_v7 }
 0xea5   :  { %v2767_v12 = vpop.eup %2766 }
 0xea6   :  { %v930_v58 = vadd.f32 1.0, %v2767_v12 }
 0xea8   :  { %2768 = vrcp.f32 %v930_v58 }
 0xeb2   :  { %v2769_v59 = vpop.eup %2768 }
 0xeb3   :  { %v934_v22 = vmul.f32 %v2769_v59, %v841_v41 }
 0xf16   :  { %v937_v60 = vpop.permute.xlu0 %936 }
 0xf17   :  { %v939_v61 = vmul.f32 %v2769_v59, %v937_v60 }
 0xf19   :  { %941 = vrot.lane.b32.xlu1 %v939_v61, %s2881_s5 }
 0xf8b   :  { %v942_v62 = vpop.permute.xlu1 %941 }
 0xf8c   :  { %v3144_v63 = vadd.f32 %v942_v62, %v934_v22  ;;  %v3236_v22 = vld [vmem:[%s3382_s8] ss:$0 sm:$0xff] }
 0xf8e   :  { %2770 = vtanh.f32 %v3144_v63 }
 0xf98   :  { %v2771_v0 = vpop.eup %2770 }
 0xf99   :  { %947 = vrot.lane.b32.xlu0 %v2771_v0, %s2880_s16 }
 0xf9d   :  { %229 = vperm.xlu0 %2722, %v195_v1  }
0x100b   :  { %v948_v5 = vpop.permute.xlu0 %947 }
0x100c   :  { %v950_v8 = vmul.f32 %v2769_v59, %v948_v5 }
0x100e   :  { %952 = vrot.lane.b32.xlu1 %v950_v8, %s2881_s5 }
0x1012   :  { %285 = vperm.xlu1 %2723, %v251_v9  }
0x101c   :  { %v230_v29 = vpop.permute.xlu0 %229 }
0x101d   :  { %v243_v31 = vmul.f32 %v230_v29, %v3068_v25 }
0x1080   :  { %v953_v15 = vpop.permute.xlu1 %952 }
0x1081   :  { %955 = vst.msk [vmem:[#allocation3 + $0x28] sm:$0xff] %vm337_vm3, %v953_v15  ;;  %2473 = vmatmul.mubr.msk.f32.vlgmr.msra.gmra.mrb[12].mxu0 %vm337_vm3, %v953_v15 }
0x1082   :  { %2656 = vmatpush3.bf16.msra.mxu0 %v2653_v4  ;;  %2494 = vmatprep.mubr.msk.f32.mxu0 %vm337_vm3, %v1162_v16 }
0x1083   :  { %2658 = vmatprep.subr.bf16.mxu0 %v2657_v14 }
0x1086   :  { %2660 = vmatpush3.bf16.msra.mxu0 %v2657_v14 }
0x1087   :  { %2673 = vmatprep.subr.bf16.mxu0 %v2876_v6 }
0x1088   :  { %v1167_v26 = vld [vmem:[#allocation3 + $0x28] sm:$0xff] }
0x1089   :  { %2495 = vmatmul.mubr.msk.f32.vlgmr.msra.gmra.mrb[14].mxu0 %vm337_vm3, %v1163_v17  ;;  %v196_v17 = vld [vmem:[%s3375_s1 + $0x38] sm:$0xff] }
0x108a   :  { %2497 = vmatprep.mubr.msk.f32.mxu0 %vm337_vm3, %v1164_v18  ;;  %2675 = vmatpush3.bf16.msra.mxu0 %v3202_v54 }
0x108b   :  { %2676 = vmatprep.subr.bf16.mxu0 %v2876_v6 }
0x108d   :  { %2498 = vmatmul.mubr.msk.f32.gmra.mrb[16].mxu0 %vm337_vm3, %v1165_v19 }
0x108e   :  { %2500 = vmatprep.mubr.msk.f32.mxu0 %vm337_vm3, %v1166_v20  ;;  %2678 = vmatpush3.bf16.msra.mxu0 %v3212_v56  ;;  %v252_v20 = vld [vmem:[%s3376_s2 + $0x38] sm:$0xff] }
0x108f   :  { %2685 = vmatprep.subr.bf16.mxu0 %v2876_v6 }
0x1091   :  { %2501 = vmatmul.mubr.msk.f32.gmra.mrb[18].mxu0 %vm337_vm3, %v1167_v26  ;;  %v286_v28 = vpop.permute.xlu1 %285 }
0x1092   :  { %v299_v30 = vmul.f32 %v286_v28, %v2995_v21 }
0x1094   :  { %v307_v32 = vadd.f32 %v299_v30, %v243_v31 }
0x1096   :  { %v322_v33 = vadd.f32 %v3001_v27, %v307_v32 }
0x1154   :  { %v1025_v34 = vpop.f32.mrb[12].mxu0 }
0x1155   :  { %v1029_v35 = vadd.f32 %v1025_v34, %v322_v33  ;;  %v2474_v36 = vpop.f32.mrb[13].mxu0 }
0x1157   :  { %2772 = vtanh.f32 %v1029_v35  ;;  %v2249_v42 = vmul.f32 -1.442695, %v1029_v35 }
0x1159   :  { %2774 = vpow2.f32 %v2249_v42 }
0x115c   :  { %v3179_v37 = vpop.f32.mrb[14].mxu0 }
0x115d   :  { %v1271_v38 = vpop.f32.mrb[15].mxu0 }
0x115e   :  { %v1272_v62 = vadd.f32 %v3236_v22, %v1271_v38 }
0x1160   :  { %v3181_v39 = vpop.f32.mrb[16].mxu0 }
0x1161   :  { %v2773_v23 = vpop.eup %2772  ;;  %v3183_v40 = vpop.f32.mrb[17].mxu0 }
0x1162   :  { %1039 = vrot.lane.b32.xlu0 %v2773_v23, %s2880_s16 }
0x1163   :  { %v2775_v43 = vpop.eup %2774 }
0x1164   :  { %v3186_v41 = vpop.f32.mrb[18].mxu0  ;;  %v1033_v44 = vadd.f32 1.0, %v2775_v43 }
0x1165   :  { %v3188_v25 = vpop.f32.mrb[19].mxu0 }
0x1166   :  { %2776 = vrcp.f32 %v1033_v44 }
0x1170   :  { %v2777_v45 = vpop.eup %2776 }
0x1171   :  { %v1037_v48 = vmul.f32 %v2777_v45, %v3144_v63 }
0x11d4   :  { %v1040_v46 = vpop.permute.xlu0 %1039 }
0x11d5   :  { %v1042_v47 = vmul.f32 %v2777_v45, %v1040_v46 }
0x11d7   :  { %1044 = vrot.lane.b32.xlu1 %v1042_v47, %s2881_s5 }
0x1249   :  { %v1045_v49 = vpop.permute.xlu1 %1044 }
0x124a   :  { %v3192_v50 = vadd.f32 %v1045_v49, %v1037_v48 }
0x124c   :  { %2778 = vtanh.f32 %v3192_v50 }
0x1256   :  { %v2779_v51 = vpop.eup %2778 }
0x1257   :  { %1050 = vrot.lane.b32.xlu0 %v2779_v51, %s2880_s16 }
0x12c9   :  { %v1051_v57 = vpop.permute.xlu0 %1050 }
0x12ca   :  { %v1053_v12 = vmul.f32 %v2777_v45, %v1051_v57 }
0x12cc   :  { %1055 = vrot.lane.b32.xlu1 %v1053_v12, %s2881_s5 }
0x133e   :  { %v1056_v58 = vpop.permute.xlu1 %1055 }
0x133f   :  { %1058 = vst.msk [vmem:[#allocation3 + $0x30] sm:$0xff] %vm337_vm3, %v1056_v58  ;;  %2484 = vmatmul.mubr.msk.f32.vlgmr.msra.gmra.mrb[8].mxu1 %vm337_vm3, %v1056_v58 }
0x1340   :  { %2663 = vmatpush3.bf16.msra.mxu1 %v3202_v54  ;;  %2514 = vmatprep.mubr.msk.f32.mxu1 %vm2877_vm2, %v2878_v11 }
0x1341   :  { %2664 = vmatprep.subr.bf16.mxu1 %v2876_v6 }
0x1344   :  { %2666 = vmatpush3.bf16.msra.mxu1 %v3212_v56 }
0x1345   :  { %2667 = vmatprep.subr.bf16.mxu1 %v2876_v6 }
0x1346   :  { %v1168_v59 = vld [vmem:[#allocation3 + $0x30] sm:$0xff] }
0x1347   :  { %2515 = vmatmul.mubr.f32.vlgmr.msra.gmra.mrb[10].mxu1 %v2878_v11  ;;  %2503 = vmatprep.mubr.msk.f32.mxu0 %vm337_vm3, %v1168_v59 }
0x1348   :  { %2669 = vmatpush3.bf16.msra.mxu1 %v3202_v54  ;;  %2525 = vmatprep.mubr.msk.f32.mxu1 %vm2877_vm2, %v2878_v11 }
0x1349   :  { %2670 = vmatprep.subr.bf16.mxu1 %v2876_v6 }
0x134c   :  { %2672 = vmatpush3.bf16.msra.mxu1 %v3212_v56 }
0x134d   :  { %2679 = vmatprep.subr.bf16.mxu1 %v2876_v6 }
0x1412   :  { %v1128_v60 = vpop.f32.mrb[8].mxu1 }
0x1413   :  { %v2485_v61 = vpop.f32.mrb[9].mxu1 }
0x141a   :  { %v1389_v63 = vpop.f32.mrb[10].mxu1 }
0x141b   :  { %v1393_v0 = vadd.f32 %v1389_v63, %v1272_v62  ;;  %v2516_v1 = vpop.f32.mrb[11].mxu1 }
0x141d   :  { %2780 = vtanh.f32 %v1393_v0  ;;  %v2261_v3 = vmul.f32 -1.442695, %v1393_v0 }
0x141f   :  { %2782 = vpow2.f32 %v2261_v3 }
0x1427   :  { %v2781_v2 = vpop.eup %2780 }
0x1428   :  { %1403 = vrot.lane.b32.xlu0 %v2781_v2, %s2880_s16 }
0x1429   :  { %v2783_v4 = vpop.eup %2782 }
0x142a   :  { %v1397_v5 = vadd.f32 1.0, %v2783_v4 }
0x142c   :  { %2784 = vrcp.f32 %v1397_v5  ;;  %v1282_v5 = vadd.f32 %v3236_v22, %v3183_v40 }
0x1436   :  { %v2785_v8 = vpop.eup %2784 }
0x1437   :  { %v1401_v13 = vmul.f32 0.0, %v2785_v8 }
0x149a   :  { %v1404_v9 = vpop.permute.xlu0 %1403 }
0x149b   :  { %v1406_v10 = vmul.f32 %v2785_v8, %v1404_v9 }
0x149d   :  { %1408 = vrot.lane.b32.xlu1 %v1406_v10, %s2881_s5 }
0x150f   :  { %v1409_v14 = vpop.permute.xlu1 %1408 }
0x1510   :  { %v1411_v15 = vadd.f32 %v1409_v14, %v1401_v13 }
0x1512   :  { %2786 = vtanh.f32 %v1411_v15 }
0x151c   :  { %v2787_v16 = vpop.eup %2786 }
0x151d   :  { %1414 = vrot.lane.b32.xlu0 %v2787_v16, %s2880_s16 }
0x1521   :  { %234 = vperm.xlu0 %2722, %v196_v17  }
0x158f   :  { %v1415_v18 = vpop.permute.xlu0 %1414 }
0x1590   :  { %v1417_v19 = vmul.f32 %v2785_v8, %v1415_v18 }
0x1592   :  { %1420 = vrot.lane.b32.xlu1 %v1417_v19, %s2881_s5 }
0x1596   :  { %290 = vperm.xlu1 %2723, %v252_v20  }
0x15a0   :  { %v235_v28 = vpop.permute.xlu0 %234 }
0x15a1   :  { %v244_v30 = vmul.f32 %v3066_v24, %v235_v28 }
0x1604   :  { %v1421_v26 = vpop.permute.xlu1 %1420 }
0x1605   :  { %2526 = vmatmul.mubr.msk.f32.vlgmr.msra.gmra.mrb[12].mxu1 %vm337_vm3, %v1421_v26 }
0x1606   :  { %2681 = vmatpush3.bf16.msra.mxu1 %v3202_v54  ;;  %2547 = vmatprep.mubr.msk.f32.mxu1 %vm2877_vm2, %v2878_v11 }
0x1607   :  { %2682 = vmatprep.subr.bf16.mxu1 %v2876_v6 }
0x160a   :  { %2684 = vmatpush3.bf16.msra.mxu1 %v3212_v56 }
0x160b   :  { %2691 = vmatprep.subr.bf16.mxu1 %v2876_v6 }
0x1615   :  { %v291_v29 = vpop.permute.xlu1 %290 }
0x1616   :  { %v300_v31 = vmul.f32 %v291_v29, %v2995_v21  ;;  %v1277_v21 = vadd.f32 %v3179_v37, %v3236_v22 }
0x1618   :  { %v308_v32 = vadd.f32 %v300_v31, %v244_v30 }
0x161a   :  { %v323_v33 = vadd.f32 %v3001_v27, %v308_v32  ;;  %v1287_v32 = vadd.f32 %v3181_v39, %v3236_v22 }
0x161c   :  { %v1132_v34 = vadd.f32 %v1128_v60, %v323_v33 }
0x161e   :  { %2788 = vtanh.f32 %v1132_v34  ;;  %v2251_v36 = vmul.f32 -1.442695, %v1132_v34 }
0x1620   :  { %2790 = vpow2.f32 %v2251_v36 }
0x1628   :  { %v2789_v35 = vpop.eup %2788 }
0x1629   :  { %1142 = vrot.lane.b32.xlu0 %v2789_v35, %s2880_s16 }
0x162a   :  { %v2791_v38 = vpop.eup %2790 }
0x162b   :  { %v1136_v23 = vadd.f32 1.0, %v2791_v38 }
0x162d   :  { %2792 = vrcp.f32 %v1136_v23 }
0x1637   :  { %v2793_v42 = vpop.eup %2792 }
0x1638   :  { %v1140_v47 = vmul.f32 %v2793_v42, %v3192_v50 }
0x169b   :  { %v1143_v43 = vpop.permute.xlu0 %1142 }
0x169c   :  { %v1145_v44 = vmul.f32 %v2793_v42, %v1143_v43 }
0x169e   :  { %1147 = vrot.lane.b32.xlu0 %v1145_v44, %s2881_s5 }
0x16d8   :  { %v1490_v24 = vpop.f32.mrb[12].mxu1 }
0x16d9   :  { %v1494_v27 = vadd.f32 %v1490_v24, %v1277_v21  ;;  %v2527_v45 = vpop.f32.mrb[13].mxu1 }
0x16db   :  { %2794 = vtanh.f32 %v1494_v27  ;;  %v2263_v52 = vmul.f32 -1.442695, %v1494_v27 }
0x16e5   :  { %v2795_v46 = vpop.eup %2794 }
0x16e6   :  { %1504 = vrot.lane.b32.xlu1 %v2795_v46, %s2880_s16 }
0x1710   :  { %v1148_v48 = vpop.permute.xlu0 %1147 }
0x1711   :  { %v1150_v49 = vadd.f32 %v1148_v48, %v1140_v47 }
0x1713   :  { %2796 = vtanh.f32 %v1150_v49  ;;  %v1292_v49 = vadd.f32 %v3236_v22, %v3188_v25 }
0x1714   :  { %2798 = vpow2.f32 %v2263_v52 }
0x171d   :  { %v2797_v51 = vpop.eup %2796 }
0x171e   :  { %1153 = vrot.lane.b32.xlu0 %v2797_v51, %s2880_s16  ;;  %v2799_v53 = vpop.eup %2798 }
0x171f   :  { %v1498_v7 = vadd.f32 1.0, %v2799_v53 }
0x1721   :  { %2800 = vrcp.f32 %v1498_v7 }
0x172b   :  { %v2801_v37 = vpop.eup %2800 }
0x172c   :  { %v1502_v50 = vmul.f32 %v2801_v37, %v1411_v15 }
0x1758   :  { %v1505_v55 = vpop.permute.xlu1 %1504 }
0x1759   :  { %v1507_v57 = vmul.f32 %v2801_v37, %v1505_v55 }
0x175b   :  { %1509 = vrot.lane.b32.xlu1 %v1507_v57, %s2881_s5 }
0x1790   :  { %v1154_v12 = vpop.permute.xlu0 %1153 }
0x1791   :  { %v1156_v58 = vmul.f32 %v2793_v42, %v1154_v12 }
0x1793   :  { %1158 = vrot.lane.b32.xlu0 %v1156_v58, %s2881_s5 }
0x17cd   :  { %v1510_v59 = vpop.permute.xlu1 %1509 }
0x17ce   :  { %v1512_v60 = vadd.f32 %v1510_v59, %v1502_v50 }
0x17d0   :  { %2802 = vtanh.f32 %v1512_v60 }
0x17da   :  { %v2803_v61 = vpop.eup %2802 }
0x17db   :  { %1515 = vrot.lane.b32.xlu1 %v2803_v61, %s2880_s16 }
0x1805   :  { %v1159_v62 = vpop.permute.xlu0 %1158 }
0x1806   :  { %1161 = vst.msk [vmem:[#allocation3 + $0x38] sm:$0xff] %vm337_vm3, %v1159_v62 }
0x180d   :  { %v1169_v63 = vld [vmem:[#allocation3 + $0x38] sm:$0xff] }
0x180e   :  { %2504 = vmatmul.mubr.msk.f32.gmra.mrb[20].mxu0 %vm337_vm3, %v1169_v63 }
0x180f   :  { %2536 = vmatprep.mubr.msk.f32.mxu0 %vm2877_vm2, %v2878_v11 }
0x184d   :  { %v1516_v0 = vpop.permute.xlu1 %1515 }
0x184e   :  { %v1518_v1 = vmul.f32 %v2801_v37, %v1516_v0 }
0x1850   :  { %1521 = vrot.lane.b32.xlu1 %v1518_v1, %s2881_s5  ;;  %v1297_v1 = vadd.f32 %v3186_v41, %v3236_v22 }
0x18c2   :  { %v1522_v2 = vpop.permute.xlu1 %1521 }
0x18c3   :  { %2537 = vmatmul.mubr.msk.f32.vlgmr.msra.gmra.mrb[22].mxu0 %vm337_vm3, %v1522_v2 }
0x18c4   :  { %2687 = vmatpush3.bf16.msra.mxu0 %v3202_v54  ;;  %2558 = vmatprep.mubr.msk.f32.mxu0 %vm2877_vm2, %v2878_v11 }
0x18c5   :  { %2688 = vmatprep.subr.bf16.mxu0 %v2876_v6 }
0x18c8   :  { %2690 = vmatpush3.bf16.msra.mxu0 %v3212_v56 }
0x18c9   :  { %2697 = vmatprep.subr.bf16.mxu0 %v2876_v6 }
0x18e1   :  { %v3281_v3 = vpop.f32.mrb[20].mxu0 }
0x18e2   :  { %v3283_v4 = vpop.f32.mrb[21].mxu0 }
0x1996   :  { %v1591_v8 = vpop.f32.mrb[22].mxu0 }
0x1997   :  { %v1595_v9 = vadd.f32 %v1591_v8, %v1282_v5  ;;  %v2538_v10 = vpop.f32.mrb[23].mxu0 }
0x1999   :  { %2804 = vtanh.f32 %v1595_v9  ;;  %v2265_v14 = vmul.f32 -1.442695, %v1595_v9 }
0x199b   :  { %2806 = vpow2.f32 %v2265_v14 }
0x19a3   :  { %v2805_v13 = vpop.eup %2804 }
0x19a4   :  { %1605 = vrot.lane.b32.xlu0 %v2805_v13, %s2880_s16 }
0x19a5   :  { %v2807_v15 = vpop.eup %2806 }
0x19a6   :  { %v1599_v16 = vadd.f32 1.0, %v2807_v15 }
0x19a8   :  { %2808 = vrcp.f32 %v1599_v16 }
0x19b2   :  { %v2809_v17 = vpop.eup %2808 }
0x19b3   :  { %v1603_v20 = vmul.f32 %v2809_v17, %v1512_v60 }
0x1a16   :  { %v1606_v18 = vpop.permute.xlu0 %1605 }
0x1a17   :  { %v1608_v19 = vmul.f32 %v2809_v17, %v1606_v18 }
0x1a19   :  { %1610 = vrot.lane.b32.xlu1 %v1608_v19, %s2881_s5 }
0x1a8b   :  { %v1611_v26 = vpop.permute.xlu1 %1610 }
0x1a8c   :  { %v1613_v40 = vadd.f32 %v1611_v26, %v1603_v20 }
0x1a8e   :  { %2810 = vtanh.f32 %v1613_v40 }
0x1a98   :  { %v2811_v28 = vpop.eup %2810 }
0x1a99   :  { %1616 = vrot.lane.b32.xlu0 %v2811_v28, %s2880_s16 }
0x1b0b   :  { %v1617_v29 = vpop.permute.xlu0 %1616 }
0x1b0c   :  { %v1619_v30 = vmul.f32 %v2809_v17, %v1617_v29 }
0x1b0e   :  { %1622 = vrot.lane.b32.xlu1 %v1619_v30, %s2881_s5 }
0x1b80   :  { %v1623_v31 = vpop.permute.xlu1 %1622 }
0x1b81   :  { %2548 = vmatmul.mubr.msk.f32.vlgmr.msra.gmra.mrb[14].mxu1 %vm337_vm3, %v1623_v31 }
0x1b82   :  { %2693 = vmatpush3.bf16.msra.mxu1 %v3202_v54  ;;  %2569 = vmatprep.mubr.msk.f32.mxu1 %vm2877_vm2, %v2878_v11 }
0x1b83   :  { %2694 = vmatprep.subr.bf16.mxu1 %v2876_v6 }
0x1b86   :  { %2696 = vmatpush3.bf16.msra.mxu1 %v3212_v56 }
0x1b87   :  { %2703 = vmatprep.subr.bf16.mxu1 %v2876_v6 }
0x1c54   :  { %v1692_v33 = vpop.f32.mrb[14].mxu1 }
0x1c55   :  { %v1696_v34 = vadd.f32 %v1692_v33, %v1287_v32  ;;  %v2549_v35 = vpop.f32.mrb[15].mxu1 }
0x1c57   :  { %2812 = vtanh.f32 %v1696_v34  ;;  %v2267_v38 = vmul.f32 -1.442695, %v1696_v34 }
0x1c59   :  { %2814 = vpow2.f32 %v2267_v38 }
0x1c61   :  { %v2813_v36 = vpop.eup %2812 }
0x1c62   :  { %1706 = vrot.lane.b32.xlu0 %v2813_v36, %s2880_s16 }
0x1c63   :  { %v2815_v23 = vpop.eup %2814 }
0x1c64   :  { %v1700_v42 = vadd.f32 1.0, %v2815_v23 }
0x1c66   :  { %2816 = vrcp.f32 %v1700_v42 }
0x1c70   :  { %v2817_v43 = vpop.eup %2816 }
0x1c71   :  { %v1704_v24 = vmul.f32 %v2817_v43, %v1613_v40  ;;  %v1302_v40 = vadd.f32 %v3236_v22, %v3283_v4 }
0x1cd4   :  { %v1707_v44 = vpop.permute.xlu0 %1706 }
0x1cd5   :  { %v1709_v21 = vmul.f32 %v2817_v43, %v1707_v44 }
0x1cd7   :  { %1711 = vrot.lane.b32.xlu1 %v1709_v21, %s2881_s5 }
0x1d49   :  { %v1712_v27 = vpop.permute.xlu1 %1711 }
0x1d4a   :  { %v1714_v39 = vadd.f32 %v1712_v27, %v1704_v24  ;;  %v1307_v24 = vadd.f32 %v3281_v3, %v3236_v22  ;;  %v2125_v3 = vld [vmem:[%s3383_s9] sm:$0xff] }
0x1d4c   :  { %2818 = vtanh.f32 %v1714_v39 }
0x1d56   :  { %v2819_v45 = vpop.eup %2818 }
0x1d57   :  { %1717 = vrot.lane.b32.xlu0 %v2819_v45, %s2880_s16 }
0x1dc9   :  { %v1718_v46 = vpop.permute.xlu0 %1717 }
0x1dca   :  { %v1720_v47 = vmul.f32 %v2817_v43, %v1718_v46 }
0x1dcc   :  { %1723 = vrot.lane.b32.xlu1 %v1720_v47, %s2881_s5 }
0x1e3e   :  { %v1724_v48 = vpop.permute.xlu1 %1723 }
0x1e3f   :  { %2559 = vmatmul.mubr.msk.f32.vlgmr.msra.gmra.mrb[24].mxu0 %vm337_vm3, %v1724_v48 }
0x1e40   :  { %2699 = vmatpush3.bf16.msra.mxu0 %v3202_v54  ;;  %2580 = vmatprep.mubr.msk.f32.mxu0 %vm2877_vm2, %v2878_v11 }
0x1e41   :  { %2700 = vmatprep.subr.bf16.mxu0 %v2876_v6 }
0x1e44   :  { %2702 = vmatpush3.bf16.msra.mxu0 %v3212_v56 }
0x1e45   :  { %2709 = vmatprep.subr.bf16.mxu0 %v2876_v6 }
0x1f12   :  { %v1793_v51 = vpop.f32.mrb[24].mxu0 }
0x1f13   :  { %v1797_v52 = vadd.f32 %v1793_v51, %v1292_v49  ;;  %v2560_v53 = vpop.f32.mrb[25].mxu0 }
0x1f15   :  { %2820 = vtanh.f32 %v1797_v52  ;;  %v2269_v37 = vmul.f32 -1.442695, %v1797_v52 }
0x1f17   :  { %2822 = vpow2.f32 %v2269_v37 }
0x1f1f   :  { %v2821_v7 = vpop.eup %2820 }
0x1f20   :  { %1807 = vrot.lane.b32.xlu0 %v2821_v7, %s2880_s16 }
0x1f21   :  { %v2823_v55 = vpop.eup %2822 }
0x1f22   :  { %v1801_v57 = vadd.f32 1.0, %v2823_v55  ;;  %v2126_v55 = vld [vmem:[%s3383_s9 + $0x8] sm:$0xff] }
0x1f24   :  { %2824 = vrcp.f32 %v1801_v57  ;;  %v2127_v57 = vld [vmem:[%s3383_s9 + $0x10] sm:$0xff] }
0x1f2e   :  { %v2825_v12 = vpop.eup %2824 }
0x1f2f   :  { %v1805_v59 = vmul.f32 %v2825_v12, %v1714_v39 }
0x1f92   :  { %v1808_v58 = vpop.permute.xlu0 %1807 }
0x1f93   :  { %v1810_v50 = vmul.f32 %v2825_v12, %v1808_v58  ;;  %v2128_v58 = vld [vmem:[%s3383_s9 + $0x18] sm:$0xff]  ;;  %s2882_s9 = smov [#allocation4]  }
0x1f94   :  { %s2219_s17 = sshll.u32 %s2882_s9, 4  ;;  %s2220_s17 = int_to_ptr.vmem [resolvable:$true] %s2219_s17 }
0x1f95   :  { %1812 = vrot.lane.b32.xlu1 %v1810_v50, %s2881_s5  ;;  %v2713_v50 = vpack.c.bf16 %v2128_v58, %v2127_v57  ;;  %p2857_p1 = scmp.lt.s32.totalorder %s2220_s17, %s2220_s17 }
0x2007   :  { %v1813_v60 = vpop.permute.xlu1 %1812 }
0x2008   :  { %v1815_v25 = vadd.f32 %v1813_v60, %v1805_v59 }
0x200a   :  { %2826 = vtanh.f32 %v1815_v25 }
0x2014   :  { %v2827_v61 = vpop.eup %2826 }
0x2015   :  { %1818 = vrot.lane.b32.xlu0 %v2827_v61, %s2880_s16 }
0x2087   :  { %v1819_v62 = vpop.permute.xlu0 %1818 }
0x2088   :  { %v1821_v63 = vmul.f32 %v2825_v12, %v1819_v62  ;;  %v2710_v12 = vpack.c.bf16 %v2126_v55, %v2125_v3  ;;  %v2276_v62 = vld [vmem:[%s3384_s10] ss:$0 sm:$0xff] }
0x208a   :  { %1824 = vrot.lane.b32.xlu1 %v1821_v63, %s2881_s5 }
0x20fc   :  { %v1825_v0 = vpop.permute.xlu1 %1824 }
0x20fd   :  { %2570 = vmatmul.mubr.msk.f32.vlgmr.msra.gmra.mrb[16].mxu1 %vm337_vm3, %v1825_v0 }
0x20fe   :  { %2705 = vmatpush3.bf16.msra.mxu1 %v3202_v54  ;;  %2591 = vmatprep.mubr.msk.f32.mxu1 %vm2877_vm2, %v2878_v11 }
0x20ff   :  { %2706 = vmatprep.subr.bf16.mxu1 %v2876_v6 }
0x2102   :  { %2708 = vmatpush3.bf16.msra.mxu1 %v3212_v56 }
0x21d0   :  { %v1894_v2 = vpop.f32.mrb[16].mxu1 }
0x21d1   :  { %v1898_v5 = vadd.f32 %v1894_v2, %v1297_v1  ;;  %v2571_v8 = vpop.f32.mrb[17].mxu1 }
0x21d3   :  { %2828 = vtanh.f32 %v1898_v5  ;;  %v2271_v10 = vmul.f32 -1.442695, %v1898_v5 }
0x21d5   :  { %2830 = vpow2.f32 %v2271_v10 }
0x21dd   :  { %v2829_v9 = vpop.eup %2828 }
0x21de   :  { %1908 = vrot.lane.b32.xlu0 %v2829_v9, %s2880_s16 }
0x21df   :  { %v2831_v54 = vpop.eup %2830 }
0x21e0   :  { %v1902_v13 = vadd.f32 1.0, %v2831_v54 }
0x21e2   :  { %2832 = vrcp.f32 %v1902_v13 }
0x21ec   :  { %v2833_v14 = vpop.eup %2832 }
0x21ed   :  { %v1906_v56 = vmul.f32 %v2833_v14, %v1815_v25 }
0x2250   :  { %v1909_v15 = vpop.permute.xlu0 %1908 }
0x2251   :  { %v1911_v16 = vmul.f32 %v2833_v14, %v1909_v15 }
0x2253   :  { %1913 = vrot.lane.b32.xlu1 %v1911_v16, %s2881_s5 }
0x22c5   :  { %v1914_v17 = vpop.permute.xlu1 %1913 }
0x22c6   :  { %v1916_v41 = vadd.f32 %v1914_v17, %v1906_v56 }
0x22c8   :  { %2834 = vtanh.f32 %v1916_v41 }
0x22d2   :  { %v2835_v18 = vpop.eup %2834 }
0x22d3   :  { %1919 = vrot.lane.b32.xlu0 %v2835_v18, %s2880_s16 }
0x2345   :  { %v1920_v19 = vpop.permute.xlu0 %1919 }
0x2346   :  { %v1922_v20 = vmul.f32 %v2833_v14, %v1920_v19 }
0x2348   :  { %1925 = vrot.lane.b32.xlu1 %v1922_v20, %s2881_s5 }
0x23ba   :  { %v1926_v26 = vpop.permute.xlu1 %1925 }
0x23bb   :  { %2581 = vmatmul.mubr.msk.f32.vlgmr.msra.gmra.mrb[26].mxu0 %vm337_vm3, %v1926_v26 }
0x23bc   :  { %2602 = vmatprep.mubr.msk.f32.mxu0 %vm2877_vm2, %v2878_v11  ;;  %2711 = vmatpush3.bf16.msra.mxu0 %v2710_v12 }
0x23bd   :  { %2712 = vmatprep.subr.bf16.mxu0 %v2876_v6 }
0x23c0   :  { %2714 = vmatpush3.bf16.msra.mxu0 %v2713_v50 }
0x248e   :  { %v1995_v28 = vpop.f32.mrb[26].mxu0 }
0x248f   :  { %v1999_v29 = vadd.f32 %v1995_v28, %v1302_v40  ;;  %v2582_v30 = vpop.f32.mrb[27].mxu0 }
0x2491   :  { %2836 = vtanh.f32 %v1999_v29  ;;  %v2273_v32 = vmul.f32 -1.442695, %v1999_v29 }
0x2493   :  { %2838 = vpow2.f32 %v2273_v32 }
0x249b   :  { %v2837_v31 = vpop.eup %2836 }
0x249c   :  { %2009 = vrot.lane.b32.xlu0 %v2837_v31, %s2880_s16 }
0x249d   :  { %v2839_v33 = vpop.eup %2838 }
0x249e   :  { %v2003_v34 = vadd.f32 1.0, %v2839_v33 }
0x24a0   :  { %2840 = vrcp.f32 %v2003_v34 }
0x24aa   :  { %v2841_v35 = vpop.eup %2840 }
0x24ab   :  { %v2007_v11 = vmul.f32 %v2841_v35, %v1916_v41 }
0x250e   :  { %v2010_v36 = vpop.permute.xlu0 %2009 }
0x250f   :  { %v2012_v38 = vmul.f32 %v2841_v35, %v2010_v36 }
0x2511   :  { %2014 = vrot.lane.b32.xlu1 %v2012_v38, %s2881_s5 }
0x2583   :  { %v2015_v23 = vpop.permute.xlu1 %2014 }
0x2584   :  { %v2017_v4 = vadd.f32 %v2015_v23, %v2007_v11 }
0x2586   :  { %2842 = vtanh.f32 %v2017_v4 }
0x2590   :  { %v2843_v42 = vpop.eup %2842 }
0x2591   :  { %2020 = vrot.lane.b32.xlu0 %v2843_v42, %s2880_s16 }
0x2603   :  { %v2021_v43 = vpop.permute.xlu0 %2020 }
0x2604   :  { %v2023_v44 = vmul.f32 %v2841_v35, %v2021_v43 }
0x2606   :  { %2026 = vrot.lane.b32.xlu1 %v2023_v44, %s2881_s5 }
0x2678   :  { %v2027_v21 = vpop.permute.xlu1 %2026 }
0x2679   :  { %2592 = vmatmul.mubr.msk.f32.vlgmr.msra.gmra.mrb[18].mxu1 %vm337_vm3, %v2027_v21 }
0x274c   :  { %v2096_v27 = vpop.f32.mrb[18].mxu1 }
0x274d   :  { %v2100_v39 = vadd.f32 %v2096_v27, %v1307_v24  ;;  %v2593_v45 = vpop.f32.mrb[19].mxu1 }
0x274f   :  { %2844 = vtanh.f32 %v2100_v39  ;;  %v2275_v47 = vmul.f32 -1.442695, %v2100_v39 }
0x2751   :  { %2846 = vpow2.f32 %v2275_v47 }
0x2759   :  { %v2845_v46 = vpop.eup %2844 }
0x275a   :  { %2110 = vrot.lane.b32.xlu0 %v2845_v46, %s2880_s16 }
0x275b   :  { %v2847_v48 = vpop.eup %2846 }
0x275c   :  { %v2104_v49 = vadd.f32 1.0, %v2847_v48 }
0x275e   :  { %2848 = vrcp.f32 %v2104_v49 }
0x2768   :  { %v2849_v51 = vpop.eup %2848 }
0x2769   :  { %v2108_v7 = vmul.f32 %v2849_v51, %v2017_v4 }
0x27cc   :  { %v2111_v52 = vpop.permute.xlu0 %2110 }
0x27cd   :  { %v2113_v53 = vmul.f32 %v2849_v51, %v2111_v52 }
0x27cf   :  { %2115 = vrot.lane.b32.xlu1 %v2113_v53, %s2881_s5 }
0x2841   :  { %v2116_v37 = vpop.permute.xlu1 %2115 }
0x2842   :  { %v2118_v22 = vadd.f32 %v2116_v37, %v2108_v7 }
0x2844   :  { %2850 = vtanh.f32 %v2118_v22 }
0x284e   :  { %v2851_v59 = vpop.eup %2850 }
0x284f   :  { %2121 = vrot.lane.b32.xlu0 %v2851_v59, %s2880_s16  ;;  %s2852_s16 = scalar_lea.vmem %s2220_s17, 32 }
0x2850   :  { %p2853_p0 = scmp.ne.s32.totalorder %s2220_s17, %s2852_s16  ;;  %p2858_p2 = scmp.lt.s32.totalorder %s2852_s16, %s2852_s16 }
0x2852   :  { %p2859_p3 = por %p2858_p2, %p2857_p1 }
0x2854   :  { %p2860_p4 = pnand %p2859_p3, %p2853_p0 }
0x28c1   :  { %v2122_v60 = vpop.permute.xlu0 %2121 }
0x28c2   :  { %v2124_v25 = vmul.f32 %v2849_v51, %v2122_v60 }
0x28c4   :  { %2137 = vrot.lane.b32.xlu1 %v2124_v25, %s2881_s5 }
0x2936   :  { %v2138_v61 = vpop.permute.xlu1 %2137 }
0x2937   :  { %2603 = vmatmul.mubr.msk.f32.vlgmr.msra.gmra.mrb[28].mxu0 %vm337_vm3, %v2138_v61 }
0x2a0a   :  { %v2207_v63 = vpop.f32.mrb[28].mxu0 }
0x2a0b   :  { %v2208_v6 = vadd.f32 %v2276_v62, %v2207_v63  ;;  %v2604_v0 = vpop.f32.mrb[29].mxu0 }
0x2a0d   :  { %2212 = vst.msk [vmem:[#allocation4] sm:$0x3] %vm2211_vm4, %v2208_v6 }
0x2a0e   :  { %2863 = shalt.err (!%p2860_p4)
}
0x2a0f   :  { %s2864_s6 = scalar_lea.hbm %s3385_s11, 32 }
0x2a10   :  { %p2865_p5 = scmp.ne.s32.totalorder %s3385_s11, %s2864_s6  ;;  %p2868_p6 = scmp.lt.u32.totalorder %s2864_s6, %s3385_s11 }
0x2a12   :  { %p2870_p7 = pnand %p2868_p6, %p2865_p5 }
0x2a14   :  { %2873 = shalt.err (!%p2870_p7)
}
0x2a15   :  { %2222 = dma.vmem_to_hbm [thread:$0]  %s2220_s17, 32, %s3385_s11, [#allocation5]  }
0x2a16   :  { %2874 = dma.done.wait [#allocation5], 32  }
0x2a17   :  { %2875 = vsyncadd [#allocation5], 4294967264 }
0x2a18   :  { %2226 = vsyncpa [#allocation5], 1 }

</bundles_post_ra>
